<compile_context>
chip_gen: v7x
topology: tpu7x:2x2x1
jax: 0.10.0
libtpu: 0.0.40
codegen_flags: <defaults>
</compile_context>

<pallas_src>
import functools
import math

import jax
import jax.numpy as jnp
from jax.experimental import pallas as pl
from jax.experimental.pallas import tpu as pltpu

EPS = 1e-5          # torch nn.LayerNorm default
NEG_INF = -1e9      # large finite negative (avoids -inf/NaN edge cases)


def _layernorm(x, w, b):
    mu = jnp.mean(x, axis=-1, keepdims=True)
    var = jnp.mean((x - mu) ** 2, axis=-1, keepdims=True)
    return (x - mu) * jax.lax.rsqrt(var + EPS) * w + b


# ---------------------------------------------------------------------------
# Fused CLIPLayer kernel: LN1 -> causal MHSA -> residual
#                         -> LN2 -> quick-GELU MLP -> residual
#                         [-> final LayerNorm on the last layer]
# ---------------------------------------------------------------------------
def clip_layer_kernel(x_ref,
                      ln1w_ref, ln1b_ref, wqkv_ref, bqkv_ref, wo_ref, bo_ref,
                      ln2w_ref, ln2b_ref, w1_ref, b1_ref, w2_ref, b2_ref,
                      lnfw_ref, lnfb_ref, o_ref,
                      *, n_head, d_head, apply_final_ln):
    bt, S, E = x_ref.shape
    rows = bt * S                       # flattened (batch_tile * seq) rows
    H, D = n_head, d_head
    Skv = ((S + 127) // 128) * 128      # lane-dense padded key length

    x = x_ref[...].reshape(rows, E)                                   # (rows, E) f32

    # --- LayerNorm 1 (f32) ---
    xn = _layernorm(x, ln1w_ref[...], ln1b_ref[...])

    # --- fused QKV projection: bf16 operands, f32 accumulation ---
    qkv = jnp.dot(xn.astype(jnp.bfloat16), wqkv_ref[...],
                  preferred_element_type=jnp.float32) + bqkv_ref[...]  # (rows, 3E)

    # Fold 1/sqrt(d_head) into q; cast q/k/v to bf16 BEFORE split / padding.
    scale = jnp.float32(1.0) / jnp.sqrt(jnp.float32(D))
    q = (qkv[:, 0 * E:1 * E] * scale).astype(jnp.bfloat16)
    k = qkv[:, 1 * E:2 * E].astype(jnp.bfloat16)
    v = qkv[:, 2 * E:3 * E].astype(jnp.bfloat16)

    # Per-(batch, head) split -> (bt*H, S, D) bf16.  (Aligned static slices +
    # stack: relayout equivalent to a reshape/transpose but robust in Mosaic.)
    def split_heads(t):
        parts = []
        for b in range(bt):
            tb = t[b * S:(b + 1) * S, :]
            for h in range(H):
                parts.append(tb[:, h * D:(h + 1) * D])
        return jnp.stack(parts, axis=0)

    qh = split_heads(q)                                               # (N, S, D)
    kh = split_heads(k)
    vh = split_heads(v)
    if Skv > S:                                                       # pad keys (bf16)
        pad = jnp.zeros((bt * H, Skv - S, D), jnp.bfloat16)
        kh = jnp.concatenate([kh, pad], axis=1)
        vh = jnp.concatenate([vh, pad], axis=1)

    # Small shared additive causal (+kv padding) mask, generated in-kernel.
    qi = jax.lax.broadcasted_iota(jnp.int32, (S, Skv), 0)
    kj = jax.lax.broadcasted_iota(jnp.int32, (S, Skv), 1)
    bias = jnp.where(kj <= qi, 0.0, NEG_INF).astype(jnp.float32)      # (S, Skv)

    # --- batched causal attention (per batch element & head) ---
    # NOTE: contraction depth is d_head (<128/256), so the score matmul will
    # not hit MXU peak; attention is a small FLOP fraction of CLIP-text.
    s = jnp.einsum('nqd,nkd->nqk', qh, kh,
                   preferred_element_type=jnp.float32)                # (N, S, Skv)
    s = s + bias                                                      # broadcast over N

    m = jnp.max(s, axis=-1, keepdims=True)
    p = jnp.exp(s - m)
    l = jnp.sum(p, axis=-1, keepdims=True)                            # (N, S, 1)

    # Deferred softmax normalisation: PV on unnormalised p, exact reciprocal
    # applied to the small (N, S, D) output.
    o_h = jnp.einsum('nqk,nkd->nqd', p.astype(jnp.bfloat16), vh,
                     preferred_element_type=jnp.float32)              # (N, S, D)
    o_h = (o_h * pl.reciprocal(l, approx=False)).astype(jnp.bfloat16)

    # Head / batch merge back to (rows, E) in bf16, then out-projection.
    attn = jnp.concatenate(
        [jnp.concatenate([o_h[b * H + h] for h in range(H)], axis=-1)
         for b in range(bt)], axis=0)                                 # (rows, E) bf16
    attn = jnp.dot(attn, wo_ref[...],
                   preferred_element_type=jnp.float32) + bo_ref[...]

    x = x + attn                                                      # residual 1

    # --- LayerNorm 2 + quick-GELU MLP (gate in bf16) ---
    xn2 = _layernorm(x, ln2w_ref[...], ln2b_ref[...])
    h1 = jnp.dot(xn2.astype(jnp.bfloat16), w1_ref[...],
                 preferred_element_type=jnp.float32) + b1_ref[...]
    h1 = h1.astype(jnp.bfloat16)
    h1 = h1 * jax.nn.sigmoid(1.702 * h1)                              # quick-GELU (bf16)
    y = jnp.dot(h1, w2_ref[...],
                preferred_element_type=jnp.float32) + b2_ref[...]

    y = x + y                                                         # residual 2

    if apply_final_ln:                                                # fused final LN
        y = _layernorm(y, lnfw_ref[...], lnfb_ref[...])

    o_ref[...] = y.reshape(bt, S, E)


# ---------------------------------------------------------------------------
# Wrappers
# ---------------------------------------------------------------------------
_SINGLE_BUFFER_OK = None


def _supports_single_buffering():
    """Probe whether pl.Buffered(1) single-buffered const specs are supported."""
    global _SINGLE_BUFFER_OK
    if _SINGLE_BUFFER_OK is not None:
        return _SINGLE_BUFFER_OK

    def _probe_kernel(w_ref, o_ref):
        o_ref[...] = w_ref[...]

    try:
        w = jnp.ones((8, 128), jnp.float32)
        out = pl.pallas_call(
            _probe_kernel,
            out_shape=jax.ShapeDtypeStruct((16, 128), jnp.float32),
            grid=(2,),
            in_specs=[pl.BlockSpec((8, 128), lambda i: (0, 0),
                                   pipeline_mode=pl.Buffered(1))],
            out_specs=pl.BlockSpec((8, 128), lambda i: (i, 0)),
        )(w)
        jax.block_until_ready(out)
        _SINGLE_BUFFER_OK = bool(jnp.all(out == 1.0))
    except Exception:
        _SINGLE_BUFFER_OK = False
    return _SINGLE_BUFFER_OK


def _const_spec(arr, single_buffer):
    """Whole array resident in VMEM, identical block for every grid step."""
    zeros = (0,) * arr.ndim
    idx = lambda g, _z=zeros: _z
    if single_buffer:
        return pl.BlockSpec(arr.shape, idx, pipeline_mode=pl.Buffered(1))
    return pl.BlockSpec(arr.shape, idx)


def _pick_batch_tile(B, S, max_rows=256):
    """Largest divisor of B with bt*S <= max_rows (v7x-friendly), preferring
    >= 2 grid steps so ("parallel",) can shard across v7x's 2 TensorCores."""
    bt = max(1, min(B, max_rows // max(S, 1)))
    if B >= 2:
        bt = min(bt, max(1, B // 2))
    while B % bt:
        bt -= 1
    return bt


def _vmem_limit_bytes(bt, S, E, n_head, weight_bytes, single_buffer):
    """Derive a scoped-VMEM request from the actual block / temporary sizes."""
    rows = bt * S
    skv = ((S + 127) // 128) * 128
    act = 2 * 2 * rows * E * 4                         # in + out blocks, double-buffered
    w = weight_bytes * (1 if single_buffer else 2)
    tmp = (rows * 3 * E * 6                            # qkv f32 + bf16 q/k/v
           + bt * n_head * S * skv * 8                 # scores f32 + p bf16 (+slack)
           + rows * 4 * E * 8                          # h1 f32 + bf16
           + rows * E * 24)                            # misc f32 temporaries
    want = int(1.5 * (act + w + tmp)) + (4 << 20)
    try:
        cap = int(pltpu.get_tpu_info().vmem_capacity_bytes)
    except Exception:
        cap = 64 << 20                                 # v7x per-TC capacity (worst case)
    return int(max(32 << 20, min(want, cap - (4 << 20))))


def clip_layer(x, p, lnf_w, lnf_b, n_head, apply_final_ln, bt, single_buffer):
    B, S, E = x.shape
    d_head = E // n_head
    weights = [p["ln1_w"], p["ln1_b"], p["wqkv"], p["bqkv"], p["wo"], p["bo"],
               p["ln2_w"], p["ln2_b"], p["w1"], p["b1"], p["w2"], p["b2"],
               lnf_w, lnf_b]
    weight_bytes = sum(math.prod(w.shape) * w.dtype.itemsize for w in weights)
    kernel = functools.partial(clip_layer_kernel, n_head=n_head, d_head=d_head,
                               apply_final_ln=apply_final_ln)
    return pl.pallas_call(
        kernel,
        out_shape=jax.ShapeDtypeStruct((B, S, E), jnp.float32),
        grid=(B // bt,),
        in_specs=[pl.BlockSpec((bt, S, E), lambda g: (g, 0, 0))]
                 + [_const_spec(w, single_buffer) for w in weights],
        out_specs=pl.BlockSpec((bt, S, E), lambda g: (g, 0, 0)),
        compiler_params=pltpu.CompilerParams(
            dimension_semantics=("parallel",),
            vmem_limit_bytes=_vmem_limit_bytes(bt, S, E, n_head,
                                               weight_bytes, single_buffer),
        ),
    )(x, *weights)


def clip_forward(tokens, params, n_head):
    # Embedding gather + position add (plain-JAX glue).
    x = params["tok_emb"][tokens] + params["pos_emb"]                 # (B, S, E)
    B, S, E = x.shape
    bt = _pick_batch_tile(B, S)
    single_buffer = _supports_single_buffering()
    n_layers = len(params["layers"])
    for i, lp in enumerate(params["layers"]):
        x = clip_layer(x, lp, params["ln_f_w"], params["ln_f_b"], n_head,
                       apply_final_ln=(i == n_layers - 1), bt=bt,
                       single_buffer=single_buffer)
    return x


# ---------------------------------------------------------------------------
# Pure-JAX reference (mirrors the PyTorch semantics, f32 math on the same
# bf16-valued weights)
# ---------------------------------------------------------------------------
def _ln_ref(x, w, b):
    mu = x.mean(-1, keepdims=True)
    var = ((x - mu) ** 2).mean(-1, keepdims=True)
    return (x - mu) / jnp.sqrt(var + EPS) * w + b


def clip_layer_ref(x, p, n_head):
    B, S, E = x.shape
    dh = E // n_head
    res = x
    xn = _ln_ref(x, p["ln1_w"][0], p["ln1_b"][0])
    qkv = xn @ p["wqkv"].astype(jnp.float32) + p["bqkv"][0]
    q, k, v = jnp.split(qkv, 3, axis=-1)
    q = q.reshape(B, S, n_head, dh).transpose(0, 2, 1, 3)
    k = k.reshape(B, S, n_head, dh).transpose(0, 2, 1, 3)
    v = v.reshape(B, S, n_head, dh).transpose(0, 2, 1, 3)
    w = jnp.einsum("bhqd,bhkd->bhqk", q, k)
    mask = jnp.triu(jnp.ones((S, S), bool), 1)
    w = jnp.where(mask, -jnp.inf, w) / jnp.sqrt(jnp.float32(dh))
    w = jax.nn.softmax(w, axis=-1)
    o = jnp.einsum("bhqk,bhkd->bhqd", w, v).transpose(0, 2, 1, 3).reshape(B, S, E)
    o = o @ p["wo"].astype(jnp.float32) + p["bo"][0]
    x = res + o
    res = x
    xn = _ln_ref(x, p["ln2_w"][0], p["ln2_b"][0])
    h = xn @ p["w1"].astype(jnp.float32) + p["b1"][0]
    h = h * jax.nn.sigmoid(1.702 * h)
    return res + h @ p["w2"].astype(jnp.float32) + p["b2"][0]


def clip_forward_ref(tokens, params, n_head):
    x = params["tok_emb"][tokens] + params["pos_emb"]
    for lp in params["layers"]:
        x = clip_layer_ref(x, lp, n_head)
    return _ln_ref(x, params["ln_f_w"][0], params["ln_f_b"][0])


# ---------------------------------------------------------------------------
# Deterministic parameter init (synthetic; shapes follow the module's __init__
# scaled down: vocab=512, n_embd=128, n_token=16, n_head=4, n_layers=2)
# ---------------------------------------------------------------------------
def init_params(key, *, n_vocab, n_embd, n_token, n_layers):
    ks = iter(jax.random.split(key, 8 + 12 * n_layers))
    s = 0.02

    def nrm(shape, dtype=jnp.float32, scale=s):
        return (scale * jax.random.normal(next(ks), shape)).astype(dtype)

    params = {
        "tok_emb": nrm((n_vocab, n_embd)),
        "pos_emb": nrm((n_token, n_embd)),
        "ln_f_w": 1.0 + nrm((1, n_embd)),
        "ln_f_b": nrm((1, n_embd)),
        "layers": [],
    }
    for _ in range(n_layers):
        params["layers"].append({
            "ln1_w": 1.0 + nrm((1, n_embd)),
            "ln1_b": nrm((1, n_embd)),
            "wqkv": nrm((n_embd, 3 * n_embd), jnp.bfloat16),
            "bqkv": nrm((1, 3 * n_embd)),
            "wo": nrm((n_embd, n_embd), jnp.bfloat16),
            "bo": nrm((1, n_embd)),
            "ln2_w": 1.0 + nrm((1, n_embd)),
            "ln2_b": nrm((1, n_embd)),
            "w1": nrm((n_embd, 4 * n_embd), jnp.bfloat16),
            "b1": nrm((1, 4 * n_embd)),
            "w2": nrm((4 * n_embd, n_embd), jnp.bfloat16),
            "b2": nrm((1, n_embd)),
        })
    return params


if __name__ == "__main__":
    B, S, E, H, L, V = 2, 16, 128, 4, 2, 512
    key = jax.random.PRNGKey(0)
    k_tok, k_par = jax.random.split(key)

    tokens = jax.random.randint(k_tok, (B, S), 0, V, dtype=jnp.int32)
    params = init_params(k_par, n_vocab=V, n_embd=E, n_token=S, n_layers=L)

    out = jax.block_until_ready(clip_forward(tokens, params, H))
    ref = jax.block_until_ready(clip_forward_ref(tokens, params, H))

    assert out.shape == (B, S, E) and out.dtype == jnp.float32
    max_err = jnp.max(jnp.abs(out - ref))
    # bf16 matmul operands + bf16 GELU gate vs f32 reference -> looser tol.
    assert jnp.allclose(out, ref, atol=5e-2, rtol=5e-2), f"max err {max_err}"
    print("KERNEL_OK")
</pallas_src>

<mosaic_0001>
module attributes {stable_mosaic.version = 11 : i64} {
  func.func @_probe_kernel(%arg0: i32, %arg1: memref<8x128xf32, #tpu.memory_space<vmem>>, %arg2: memref<8x128xf32, #tpu.memory_space<vmem>>) attributes {dimension_semantics = [#tpu.dimension_semantics<arbitrary>], iteration_bounds = array<i64: 2>, scalar_prefetch = 0 : i64, scratch_operands = 0 : i64, tpu.core_type = #tpu.core_type<tc>, window_params = [{pipeline_mode = #tpu.pipeline_mode<synchronous>, transform_indices = @transform_0, window_bounds = array<i64: 8, 128>}, {transform_indices = @transform_1, window_bounds = array<i64: 8, 128>}]} {
    %c0 = arith.constant 0 : index
    %c0_0 = arith.constant 0 : index
    %0 = vector.load %arg1[%c0, %c0_0] : memref<8x128xf32, #tpu.memory_space<vmem>>, vector<8x128xf32>
    %c0_1 = arith.constant 0 : index
    %c0_2 = arith.constant 0 : index
    %1 = vector.load %arg2[%c0_1, %c0_2] : memref<8x128xf32, #tpu.memory_space<vmem>>, vector<8x128xf32>
    tpu.vector_store %arg2[%c0_1, %c0_2], %0 {strides = array<i32>} : memref<8x128xf32, #tpu.memory_space<vmem>>, vector<8x128xf32>,
    return
  }
  func.func @transform_0(%arg0: i32) -> (i32, i32) {
    %c0_i32 = arith.constant 0 : i32
    %c0_i32_0 = arith.constant 0 : i32
    %c0_i32_1 = arith.constant 0 : i32
    return %c0_i32, %c0_i32_0 : i32, i32
  }
  func.func @transform_1(%arg0: i32) -> (i32, i32) {
    %c0_i32 = arith.constant 0 : i32
    %c0_i32_0 = arith.constant 0 : i32
    return %arg0, %c0_i32 : i32, i32
  }
}

module attributes {stable_mosaic.version = 11 : i64} {
  func.func @clip_layer_kernel(%arg0: i32, %arg1: memref<1x16x128xf32, #tpu.memory_space<vmem>>, %arg2: memref<1x128xf32, #tpu.memory_space<vmem>>, %arg3: memref<1x128xf32, #tpu.memory_space<vmem>>, %arg4: memref<128x384xbf16, #tpu.memory_space<vmem>>, %arg5: memref<1x384xf32, #tpu.memory_space<vmem>>, %arg6: memref<128x128xbf16, #tpu.memory_space<vmem>>, %arg7: memref<1x128xf32, #tpu.memory_space<vmem>>, %arg8: memref<1x128xf32, #tpu.memory_space<vmem>>, %arg9: memref<1x128xf32, #tpu.memory_space<vmem>>, %arg10: memref<128x512xbf16, #tpu.memory_space<vmem>>, %arg11: memref<1x512xf32, #tpu.memory_space<vmem>>, %arg12: memref<512x128xbf16, #tpu.memory_space<vmem>>, %arg13: memref<1x128xf32, #tpu.memory_space<vmem>>, %arg14: memref<1x128xf32, #tpu.memory_space<vmem>>, %arg15: memref<1x128xf32, #tpu.memory_space<vmem>>, %arg16: memref<1x16x128xf32, #tpu.memory_space<vmem>>) attributes {dimension_semantics = [#tpu.dimension_semantics<parallel>], iteration_bounds = array<i64: 2>, scalar_prefetch = 0 : i64, scratch_operands = 0 : i64, tpu.core_type = #tpu.core_type<tc>, window_params = [{transform_indices = @transform_0, window_bounds = array<i64: 1, 16, 128>}, {pipeline_mode = #tpu.pipeline_mode<synchronous>, transform_indices = @transform_1, window_bounds = array<i64: 1, 128>}, {pipeline_mode = #tpu.pipeline_mode<synchronous>, transform_indices = @transform_2, window_bounds = array<i64: 1, 128>}, {pipeline_mode = #tpu.pipeline_mode<synchronous>, transform_indices = @transform_3, window_bounds = array<i64: 128, 384>}, {pipeline_mode = #tpu.pipeline_mode<synchronous>, transform_indices = @transform_4, window_bounds = array<i64: 1, 384>}, {pipeline_mode = #tpu.pipeline_mode<synchronous>, transform_indices = @transform_5, window_bounds = array<i64: 128, 128>}, {pipeline_mode = #tpu.pipeline_mode<synchronous>, transform_indices = @transform_6, window_bounds = array<i64: 1, 128>}, {pipeline_mode = #tpu.pipeline_mode<synchronous>, transform_indices = @transform_7, window_bounds = array<i64: 1, 128>}, {pipeline_mode = #tpu.pipeline_mode<synchronous>, transform_indices = @transform_8, window_bounds = array<i64: 1, 128>}, {pipeline_mode = #tpu.pipeline_mode<synchronous>, transform_indices = @transform_9, window_bounds = array<i64: 128, 512>}, {pipeline_mode = #tpu.pipeline_mode<synchronous>, transform_indices = @transform_10, window_bounds = array<i64: 1, 512>}, {pipeline_mode = #tpu.pipeline_mode<synchronous>, transform_indices = @transform_11, window_bounds = array<i64: 512, 128>}, {pipeline_mode = #tpu.pipeline_mode<synchronous>, transform_indices = @transform_12, window_bounds = array<i64: 1, 128>}, {pipeline_mode = #tpu.pipeline_mode<synchronous>, transform_indices = @transform_13, window_bounds = array<i64: 1, 128>}, {pipeline_mode = #tpu.pipeline_mode<synchronous>, transform_indices = @transform_14, window_bounds = array<i64: 1, 128>}, {transform_indices = @transform_15, window_bounds = array<i64: 1, 16, 128>}]} {
    %c0 = arith.constant 0 : index
    %c0_0 = arith.constant 0 : index
    %c0_1 = arith.constant 0 : index
    %0 = vector.load %arg1[%c0, %c0_0, %c0_1] : memref<1x16x128xf32, #tpu.memory_space<vmem>>, vector<1x16x128xf32>
    %1 = vector.shape_cast %0 : vector<1x16x128xf32> to vector<16x128xf32>
    %c0_2 = arith.constant 0 : index
    %c0_3 = arith.constant 0 : index
    %2 = vector.load %arg2[%c0_2, %c0_3] : memref<1x128xf32, #tpu.memory_space<vmem>>, vector<1x128xf32>
    %c0_4 = arith.constant 0 : index
    %c0_5 = arith.constant 0 : index
    %3 = vector.load %arg3[%c0_4, %c0_5] : memref<1x128xf32, #tpu.memory_space<vmem>>, vector<1x128xf32>
    %cst = arith.constant dense<0.000000e+00> : vector<16xf32>
    %4 = vector.multi_reduction <add>, %1, %cst [1] : vector<16x128xf32> to vector<16xf32>
    %5 = vector.shape_cast %4 : vector<16xf32> to vector<16x1xf32>
    %cst_6 = arith.constant 1.280000e+02 : f32
    %6 = vector.broadcast %cst_6 : f32 to vector<16x1xf32>
    %7 = arith.divf %5, %6 : vector<16x1xf32>
    %8 = vector.broadcast %7 : vector<16x1xf32> to vector<16x128xf32>
    %9 = arith.subf %1, %8 : vector<16x128xf32>
    %10 = arith.mulf %9, %9 : vector<16x128xf32>
    %cst_7 = arith.constant dense<0.000000e+00> : vector<16xf32>
    %11 = vector.multi_reduction <add>, %10, %cst_7 [1] : vector<16x128xf32> to vector<16xf32>
    %12 = vector.shape_cast %11 : vector<16xf32> to vector<16x1xf32>
    %cst_8 = arith.constant 1.280000e+02 : f32
    %13 = vector.broadcast %cst_8 : f32 to vector<16x1xf32>
    %14 = arith.divf %12, %13 : vector<16x1xf32>
    %15 = vector.broadcast %7 : vector<16x1xf32> to vector<16x128xf32>
    %16 = arith.subf %1, %15 : vector<16x128xf32>
    %cst_9 = arith.constant 9.99999974E-6 : f32
    %17 = vector.broadcast %cst_9 : f32 to vector<16x1xf32>
    %18 = arith.addf %14, %17 : vector<16x1xf32>
    %19 = math.rsqrt %18 : vector<16x1xf32>
    %20 = vector.broadcast %19 : vector<16x1xf32> to vector<16x128xf32>
    %21 = arith.mulf %16, %20 : vector<16x128xf32>
    %22 = vector.broadcast %2 : vector<1x128xf32> to vector<16x128xf32>
    %23 = arith.mulf %21, %22 : vector<16x128xf32>
    %24 = vector.broadcast %3 : vector<1x128xf32> to vector<16x128xf32>
    %25 = arith.addf %23, %24 : vector<16x128xf32>
    %26 = arith.truncf %25 : vector<16x128xf32> to vector<16x128xbf16>
    %c0_10 = arith.constant 0 : index
    %c0_11 = arith.constant 0 : index
    %27 = vector.load %arg4[%c0_10, %c0_11] : memref<128x384xbf16, #tpu.memory_space<vmem>>, vector<128x384xbf16>
    %cst_12 = arith.constant dense<0.000000e+00> : vector<16x384xf32>
    %28 = tpu.matmul %26, %27, %cst_12 {dimension_numbers = #tpu.dot_dimension_numbers<[1], [0], [0], [1], [0, 0, 1, 1], [], []>} : vector<16x128xbf16>, vector<128x384xbf16>, vector<16x384xf32> -> vector<16x384xf32>
    %c0_13 = arith.constant 0 : index
    %c0_14 = arith.constant 0 : index
    %29 = vector.load %arg5[%c0_13, %c0_14] : memref<1x384xf32, #tpu.memory_space<vmem>>, vector<1x384xf32>
    %30 = vector.broadcast %29 : vector<1x384xf32> to vector<16x384xf32>
    %31 = arith.addf %28, %30 : vector<16x384xf32>
    %cst_15 = arith.constant 3.200000e+01 : f32
    %32 = math.sqrt %cst_15 : f32
    %cst_16 = arith.constant 1.000000e+00 : f32
    %33 = arith.divf %cst_16, %32 : f32
    %34 = vector.extract_strided_slice %31 {offsets = [0, 0], sizes = [16, 128], strides = [1, 1]} : vector<16x384xf32> to vector<16x128xf32>
    %35 = vector.broadcast %33 : f32 to vector<16x128xf32>
    %36 = arith.mulf %34, %35 : vector<16x128xf32>
    %37 = arith.truncf %36 : vector<16x128xf32> to vector<16x128xbf16>
    %38 = vector.extract_strided_slice %31 {offsets = [0, 128], sizes = [16, 128], strides = [1, 1]} : vector<16x384xf32> to vector<16x128xf32>
    %39 = arith.truncf %38 : vector<16x128xf32> to vector<16x128xbf16>
    %40 = vector.extract_strided_slice %31 {offsets = [0, 256], sizes = [16, 128], strides = [1, 1]} : vector<16x384xf32> to vector<16x128xf32>
    %41 = arith.truncf %40 : vector<16x128xf32> to vector<16x128xbf16>
    %42 = vector.extract_strided_slice %37 {offsets = [0, 0], sizes = [16, 32], strides = [1, 1]} : vector<16x128xbf16> to vector<16x32xbf16>
    %43 = vector.extract_strided_slice %37 {offsets = [0, 32], sizes = [16, 32], strides = [1, 1]} : vector<16x128xbf16> to vector<16x32xbf16>
    %44 = vector.extract_strided_slice %37 {offsets = [0, 64], sizes = [16, 32], strides = [1, 1]} : vector<16x128xbf16> to vector<16x32xbf16>
    %45 = vector.extract_strided_slice %37 {offsets = [0, 96], sizes = [16, 32], strides = [1, 1]} : vector<16x128xbf16> to vector<16x32xbf16>
    %46 = vector.shape_cast %42 : vector<16x32xbf16> to vector<1x16x32xbf16>
    %47 = vector.shape_cast %43 : vector<16x32xbf16> to vector<1x16x32xbf16>
    %48 = vector.shape_cast %44 : vector<16x32xbf16> to vector<1x16x32xbf16>
    %49 = vector.shape_cast %45 : vector<16x32xbf16> to vector<1x16x32xbf16>
    %50 = tpu.concatenate %46, %47, %48, %49 in 0 : vector<1x16x32xbf16>, vector<1x16x32xbf16>, vector<1x16x32xbf16>, vector<1x16x32xbf16> -> vector<4x16x32xbf16>
    %51 = vector.extract_strided_slice %39 {offsets = [0, 0], sizes = [16, 32], strides = [1, 1]} : vector<16x128xbf16> to vector<16x32xbf16>
    %52 = vector.extract_strided_slice %39 {offsets = [0, 32], sizes = [16, 32], strides = [1, 1]} : vector<16x128xbf16> to vector<16x32xbf16>
    %53 = vector.extract_strided_slice %39 {offsets = [0, 64], sizes = [16, 32], strides = [1, 1]} : vector<16x128xbf16> to vector<16x32xbf16>
    %54 = vector.extract_strided_slice %39 {offsets = [0, 96], sizes = [16, 32], strides = [1, 1]} : vector<16x128xbf16> to vector<16x32xbf16>
    %55 = vector.shape_cast %51 : vector<16x32xbf16> to vector<1x16x32xbf16>
    %56 = vector.shape_cast %52 : vector<16x32xbf16> to vector<1x16x32xbf16>
    %57 = vector.shape_cast %53 : vector<16x32xbf16> to vector<1x16x32xbf16>
    %58 = vector.shape_cast %54 : vector<16x32xbf16> to vector<1x16x32xbf16>
    %59 = tpu.concatenate %55, %56, %57, %58 in 0 : vector<1x16x32xbf16>, vector<1x16x32xbf16>, vector<1x16x32xbf16>, vector<1x16x32xbf16> -> vector<4x16x32xbf16>
    %60 = vector.extract_strided_slice %41 {offsets = [0, 0], sizes = [16, 32], strides = [1, 1]} : vector<16x128xbf16> to vector<16x32xbf16>
    %61 = vector.extract_strided_slice %41 {offsets = [0, 32], sizes = [16, 32], strides = [1, 1]} : vector<16x128xbf16> to vector<16x32xbf16>
    %62 = vector.extract_strided_slice %41 {offsets = [0, 64], sizes = [16, 32], strides = [1, 1]} : vector<16x128xbf16> to vector<16x32xbf16>
    %63 = vector.extract_strided_slice %41 {offsets = [0, 96], sizes = [16, 32], strides = [1, 1]} : vector<16x128xbf16> to vector<16x32xbf16>
    %64 = vector.shape_cast %60 : vector<16x32xbf16> to vector<1x16x32xbf16>
    %65 = vector.shape_cast %61 : vector<16x32xbf16> to vector<1x16x32xbf16>
    %66 = vector.shape_cast %62 : vector<16x32xbf16> to vector<1x16x32xbf16>
    %67 = vector.shape_cast %63 : vector<16x32xbf16> to vector<1x16x32xbf16>
    %68 = tpu.concatenate %64, %65, %66, %67 in 0 : vector<1x16x32xbf16>, vector<1x16x32xbf16>, vector<1x16x32xbf16>, vector<1x16x32xbf16> -> vector<4x16x32xbf16>
    %cst_17 = arith.constant 0.000000e+00 : bf16
    %69 = vector.broadcast %cst_17 : bf16 to vector<4x112x32xbf16>
    %70 = tpu.concatenate %59, %69 in 1 : vector<4x16x32xbf16>, vector<4x112x32xbf16> -> vector<4x128x32xbf16>
    %71 = tpu.concatenate %68, %69 in 1 : vector<4x16x32xbf16>, vector<4x112x32xbf16> -> vector<4x128x32xbf16>
    %72 = tpu.iota {dimensions = array<i32: 0>} : vector<16x128xi32>
    %73 = tpu.iota {dimensions = array<i32: 1>} : vector<16x128xi32>
    %74 = arith.cmpi sle, %73, %72 : vector<16x128xi32>
    %cst_18 = arith.constant 0.000000e+00 : f32
    %cst_19 = arith.constant -1.000000e+09 : f32
    %75 = vector.broadcast %cst_18 : f32 to vector<16x128xf32>
    %76 = vector.broadcast %cst_19 : f32 to vector<16x128xf32>
    %77 = arith.select %74, %75, %76 : vector<16x128xi1>, vector<16x128xf32>
    "tpu.trace_start"() <{level = 10 : i32, message = "nqd,nkd->nqk"}> : () -> ()
    %cst_20 = arith.constant dense<0.000000e+00> : vector<4x16x128xf32>
    %78 = tpu.matmul %50, %70, %cst_20 {dimension_numbers = #tpu.dot_dimension_numbers<[2], [2], [1], [1], [0, 0, 0, 1, 1, 1], [0], [0]>} : vector<4x16x32xbf16>, vector<4x128x32xbf16>, vector<4x16x128xf32> -> vector<4x16x128xf32>
    "tpu.trace_stop"() : () -> ()
    %79 = vector.shape_cast %77 : vector<16x128xf32> to vector<1x16x128xf32>
    %80 = vector.broadcast %79 : vector<1x16x128xf32> to vector<4x16x128xf32>
    %81 = arith.addf %78, %80 : vector<4x16x128xf32>
    %cst_21 = arith.constant dense<0xFF800000> : vector<4x16xf32>
    %82 = vector.multi_reduction <maximumf>, %81, %cst_21 [2] : vector<4x16x128xf32> to vector<4x16xf32>
    %83 = vector.shape_cast %82 : vector<4x16xf32> to vector<4x16x1xf32>
    %84 = vector.broadcast %83 : vector<4x16x1xf32> to vector<4x16x128xf32>
    %85 = arith.subf %81, %84 : vector<4x16x128xf32>
    %86 = math.exp %85 : vector<4x16x128xf32>
    %cst_22 = arith.constant dense<0.000000e+00> : vector<4x16xf32>
    %87 = vector.multi_reduction <add>, %86, %cst_22 [2] : vector<4x16x128xf32> to vector<4x16xf32>
    %88 = vector.shape_cast %87 : vector<4x16xf32> to vector<4x16x1xf32>
    %89 = arith.truncf %86 : vector<4x16x128xf32> to vector<4x16x128xbf16>
    "tpu.trace_start"() <{level = 10 : i32, message = "nqk,nkd->nqd"}> : () -> ()
    %cst_23 = arith.constant dense<0.000000e+00> : vector<4x16x32xf32>
    %90 = tpu.matmul %89, %71, %cst_23 {dimension_numbers = #tpu.dot_dimension_numbers<[2], [1], [1], [2], [0, 0, 0, 1, 1, 2], [0], [0]>} : vector<4x16x128xbf16>, vector<4x128x32xbf16>, vector<4x16x32xf32> -> vector<4x16x32xf32>
    "tpu.trace_stop"() : () -> ()
    %91 = tpu.reciprocal %88 : vector<4x16x1xf32> -> vector<4x16x1xf32>
    %92 = vector.broadcast %91 : vector<4x16x1xf32> to vector<4x16x32xf32>
    %93 = arith.mulf %90, %92 : vector<4x16x32xf32>
    %94 = arith.truncf %93 : vector<4x16x32xf32> to vector<4x16x32xbf16>
    %95 = vector.extract_strided_slice %94 {offsets = [0, 0, 0], sizes = [1, 16, 32], strides = [1, 1, 1]} : vector<4x16x32xbf16> to vector<1x16x32xbf16>
    %96 = vector.shape_cast %95 : vector<1x16x32xbf16> to vector<16x32xbf16>
    %97 = vector.extract_strided_slice %94 {offsets = [1, 0, 0], sizes = [1, 16, 32], strides = [1, 1, 1]} : vector<4x16x32xbf16> to vector<1x16x32xbf16>
    %98 = vector.shape_cast %97 : vector<1x16x32xbf16> to vector<16x32xbf16>
    %99 = vector.extract_strided_slice %94 {offsets = [2, 0, 0], sizes = [1, 16, 32], strides = [1, 1, 1]} : vector<4x16x32xbf16> to vector<1x16x32xbf16>
    %100 = vector.shape_cast %99 : vector<1x16x32xbf16> to vector<16x32xbf16>
    %101 = vector.extract_strided_slice %94 {offsets = [3, 0, 0], sizes = [1, 16, 32], strides = [1, 1, 1]} : vector<4x16x32xbf16> to vector<1x16x32xbf16>
    %102 = vector.shape_cast %101 : vector<1x16x32xbf16> to vector<16x32xbf16>
    %103 = tpu.concatenate %96, %98, %100, %102 in 1 : vector<16x32xbf16>, vector<16x32xbf16>, vector<16x32xbf16>, vector<16x32xbf16> -> vector<16x128xbf16>
    %c0_24 = arith.constant 0 : index
    %c0_25 = arith.constant 0 : index
    %104 = vector.load %arg6[%c0_24, %c0_25] : memref<128x128xbf16, #tpu.memory_space<vmem>>, vector<128x128xbf16>
    %cst_26 = arith.constant dense<0.000000e+00> : vector<16x128xf32>
    %105 = tpu.matmul %103, %104, %cst_26 {dimension_numbers = #tpu.dot_dimension_numbers<[1], [0], [0], [1], [0, 0, 1, 1], [], []>} : vector<16x128xbf16>, vector<128x128xbf16>, vector<16x128xf32> -> vector<16x128xf32>
    %c0_27 = arith.constant 0 : index
    %c0_28 = arith.constant 0 : index
    %106 = vector.load %arg7[%c0_27, %c0_28] : memref<1x128xf32, #tpu.memory_space<vmem>>, vector<1x128xf32>
    %107 = vector.broadcast %106 : vector<1x128xf32> to vector<16x128xf32>
    %108 = arith.addf %105, %107 : vector<16x128xf32>
    %109 = arith.addf %1, %108 : vector<16x128xf32>
    %c0_29 = arith.constant 0 : index
    %c0_30 = arith.constant 0 : index
    %110 = vector.load %arg8[%c0_29, %c0_30] : memref<1x128xf32, #tpu.memory_space<vmem>>, vector<1x128xf32>
    %c0_31 = arith.constant 0 : index
    %c0_32 = arith.constant 0 : index
    %111 = vector.load %arg9[%c0_31, %c0_32] : memref<1x128xf32, #tpu.memory_space<vmem>>, vector<1x128xf32>
    %cst_33 = arith.constant dense<0.000000e+00> : vector<16xf32>
    %112 = vector.multi_reduction <add>, %109, %cst_33 [1] : vector<16x128xf32> to vector<16xf32>
    %113 = vector.shape_cast %112 : vector<16xf32> to vector<16x1xf32>
    %cst_34 = arith.constant 1.280000e+02 : f32
    %114 = vector.broadcast %cst_34 : f32 to vector<16x1xf32>
    %115 = arith.divf %113, %114 : vector<16x1xf32>
    %116 = vector.broadcast %115 : vector<16x1xf32> to vector<16x128xf32>
    %117 = arith.subf %109, %116 : vector<16x128xf32>
    %118 = arith.mulf %117, %117 : vector<16x128xf32>
    %cst_35 = arith.constant dense<0.000000e+00> : vector<16xf32>
    %119 = vector.multi_reduction <add>, %118, %cst_35 [1] : vector<16x128xf32> to vector<16xf32>
    %120 = vector.shape_cast %119 : vector<16xf32> to vector<16x1xf32>
    %cst_36 = arith.constant 1.280000e+02 : f32
    %121 = vector.broadcast %cst_36 : f32 to vector<16x1xf32>
    %122 = arith.divf %120, %121 : vector<16x1xf32>
    %123 = vector.broadcast %115 : vector<16x1xf32> to vector<16x128xf32>
    %124 = arith.subf %109, %123 : vector<16x128xf32>
    %cst_37 = arith.constant 9.99999974E-6 : f32
    %125 = vector.broadcast %cst_37 : f32 to vector<16x1xf32>
    %126 = arith.addf %122, %125 : vector<16x1xf32>
    %127 = math.rsqrt %126 : vector<16x1xf32>
    %128 = vector.broadcast %127 : vector<16x1xf32> to vector<16x128xf32>
    %129 = arith.mulf %124, %128 : vector<16x128xf32>
    %130 = vector.broadcast %110 : vector<1x128xf32> to vector<16x128xf32>
    %131 = arith.mulf %129, %130 : vector<16x128xf32>
    %132 = vector.broadcast %111 : vector<1x128xf32> to vector<16x128xf32>
    %133 = arith.addf %131, %132 : vector<16x128xf32>
    %134 = arith.truncf %133 : vector<16x128xf32> to vector<16x128xbf16>
    %c0_38 = arith.constant 0 : index
    %c0_39 = arith.constant 0 : index
    %135 = vector.load %arg10[%c0_38, %c0_39] : memref<128x512xbf16, #tpu.memory_space<vmem>>, vector<128x512xbf16>
    %cst_40 = arith.constant dense<0.000000e+00> : vector<16x512xf32>
    %136 = tpu.matmul %134, %135, %cst_40 {dimension_numbers = #tpu.dot_dimension_numbers<[1], [0], [0], [1], [0, 0, 1, 1], [], []>} : vector<16x128xbf16>, vector<128x512xbf16>, vector<16x512xf32> -> vector<16x512xf32>
    %c0_41 = arith.constant 0 : index
    %c0_42 = arith.constant 0 : index
    %137 = vector.load %arg11[%c0_41, %c0_42] : memref<1x512xf32, #tpu.memory_space<vmem>>, vector<1x512xf32>
    %138 = vector.broadcast %137 : vector<1x512xf32> to vector<16x512xf32>
    %139 = arith.addf %136, %138 : vector<16x512xf32>
    %140 = arith.truncf %139 : vector<16x512xf32> to vector<16x512xbf16>
    %cst_43 = arith.constant 1.703130e+00 : bf16
    %141 = vector.broadcast %cst_43 : bf16 to vector<16x512xbf16>
    %142 = arith.mulf %141, %140 : vector<16x512xbf16>
    %143 = arith.negf %142 : vector<16x512xbf16>
    %144 = math.exp %143 : vector<16x512xbf16>
    %cst_44 = arith.constant 1.000000e+00 : bf16
    %145 = vector.broadcast %cst_44 : bf16 to vector<16x512xbf16>
    %146 = arith.addf %145, %144 : vector<16x512xbf16>
    %147 = arith.divf %145, %146 : vector<16x512xbf16>
    %148 = arith.mulf %140, %147 : vector<16x512xbf16>
    %c0_45 = arith.constant 0 : index
    %c0_46 = arith.constant 0 : index
    %149 = vector.load %arg12[%c0_45, %c0_46] : memref<512x128xbf16, #tpu.memory_space<vmem>>, vector<512x128xbf16>
    %cst_47 = arith.constant dense<0.000000e+00> : vector<16x128xf32>
    %150 = tpu.matmul %148, %149, %cst_47 {dimension_numbers = #tpu.dot_dimension_numbers<[1], [0], [0], [1], [0, 0, 1, 1], [], []>} : vector<16x512xbf16>, vector<512x128xbf16>, vector<16x128xf32> -> vector<16x128xf32>
    %c0_48 = arith.constant 0 : index
    %c0_49 = arith.constant 0 : index
    %151 = vector.load %arg13[%c0_48, %c0_49] : memref<1x128xf32, #tpu.memory_space<vmem>>, vector<1x128xf32>
    %152 = vector.broadcast %151 : vector<1x128xf32> to vector<16x128xf32>
    %153 = arith.addf %150, %152 : vector<16x128xf32>
    %154 = arith.addf %109, %153 : vector<16x128xf32>
    %155 = vector.shape_cast %154 : vector<16x128xf32> to vector<1x16x128xf32>
    %c0_50 = arith.constant 0 : index
    %c0_51 = arith.constant 0 : index
    %c0_52 = arith.constant 0 : index
    %156 = vector.load %arg16[%c0_50, %c0_51, %c0_52] : memref<1x16x128xf32, #tpu.memory_space<vmem>>, vector<1x16x128xf32>
    tpu.vector_store %arg16[%c0_50, %c0_51, %c0_52], %155 {strides = array<i32>} : memref<1x16x128xf32, #tpu.memory_space<vmem>>, vector<1x16x128xf32>,
    return
  }
  func.func @transform_0(%arg0: i32) -> (i32, i32, i32) {
    %c0_i32 = arith.constant 0 : i32
    %c0_i32_0 = arith.constant 0 : i32
    %c0_i32_1 = arith.constant 0 : i32
    return %arg0, %c0_i32, %c0_i32_0 : i32, i32, i32
  }
  func.func @transform_1(%arg0: i32) -> (i32, i32) {
    %c0_i32 = arith.constant 0 : i32
    %c0_i32_0 = arith.constant 0 : i32
    %c0_i32_1 = arith.constant 0 : i32
    return %c0_i32, %c0_i32_0 : i32, i32
  }
  func.func @transform_2(%arg0: i32) -> (i32, i32) {
    %c0_i32 = arith.constant 0 : i32
    %c0_i32_0 = arith.constant 0 : i32
    %c0_i32_1 = arith.constant 0 : i32
    return %c0_i32, %c0_i32_0 : i32, i32
  }
  func.func @transform_3(%arg0: i32) -> (i32, i32) {
    %c0_i32 = arith.constant 0 : i32
    %c0_i32_0 = arith.constant 0 : i32
    %c0_i32_1 = arith.constant 0 : i32
    return %c0_i32, %c0_i32_0 : i32, i32
  }
  func.func @transform_4(%arg0: i32) -> (i32, i32) {
    %c0_i32 = arith.constant 0 : i32
    %c0_i32_0 = arith.constant 0 : i32
    %c0_i32_1 = arith.constant 0 : i32
    return %c0_i32, %c0_i32_0 : i32, i32
  }
  func.func @transform_5(%arg0: i32) -> (i32, i32) {
    %c0_i32 = arith.constant 0 : i32
    %c0_i32_0 = arith.constant 0 : i32
    %c0_i32_1 = arith.constant 0 : i32
    return %c0_i32, %c0_i32_0 : i32, i32
  }
  func.func @transform_6(%arg0: i32) -> (i32, i32) {
    %c0_i32 = arith.constant 0 : i32
    %c0_i32_0 = arith.constant 0 : i32
    %c0_i32_1 = arith.constant 0 : i32
    return %c0_i32, %c0_i32_0 : i32, i32
  }
  func.func @transform_7(%arg0: i32) -> (i32, i32) {
    %c0_i32 = arith.constant 0 : i32
    %c0_i32_0 = arith.constant 0 : i32
    %c0_i32_1 = arith.constant 0 : i32
    return %c0_i32, %c0_i32_0 : i32, i32
  }
  func.func @transform_8(%arg0: i32) -> (i32, i32) {
    %c0_i32 = arith.constant 0 : i32
    %c0_i32_0 = arith.constant 0 : i32
    %c0_i32_1 = arith.constant 0 : i32
    return %c0_i32, %c0_i32_0 : i32, i32
  }
  func.func @transform_9(%arg0: i32) -> (i32, i32) {
    %c0_i32 = arith.constant 0 : i32
    %c0_i32_0 = arith.constant 0 : i32
    %c0_i32_1 = arith.constant 0 : i32
    return %c0_i32, %c0_i32_0 : i32, i32
  }
  func.func @transform_10(%arg0: i32) -> (i32, i32) {
    %c0_i32 = arith.constant 0 : i32
    %c0_i32_0 = arith.constant 0 : i32
    %c0_i32_1 = arith.constant 0 : i32
    return %c0_i32, %c0_i32_0 : i32, i32
  }
  func.func @transform_11(%arg0: i32) -> (i32, i32) {
    %c0_i32 = arith.constant 0 : i32
    %c0_i32_0 = arith.constant 0 : i32
    %c0_i32_1 = arith.constant 0 : i32
    return %c0_i32, %c0_i32_0 : i32, i32
  }
  func.func @transform_12(%arg0: i32) -> (i32, i32) {
    %c0_i32 = arith.constant 0 : i32
    %c0_i32_0 = arith.constant 0 : i32
    %c0_i32_1 = arith.constant 0 : i32
    return %c0_i32, %c0_i32_0 : i32, i32
  }
  func.func @transform_13(%arg0: i32) -> (i32, i32) {
    %c0_i32 = arith.constant 0 : i32
    %c0_i32_0 = arith.constant 0 : i32
    %c0_i32_1 = arith.constant 0 : i32
    return %c0_i32, %c0_i32_0 : i32, i32
  }
  func.func @transform_14(%arg0: i32) -> (i32, i32) {
    %c0_i32 = arith.constant 0 : i32
    %c0_i32_0 = arith.constant 0 : i32
    %c0_i32_1 = arith.constant 0 : i32
    return %c0_i32, %c0_i32_0 : i32, i32
  }
  func.func @transform_15(%arg0: i32) -> (i32, i32, i32) {
    %c0_i32 = arith.constant 0 : i32
    %c0_i32_0 = arith.constant 0 : i32
    %c0_i32_1 = arith.constant 0 : i32
    return %arg0, %c0_i32, %c0_i32_0 : i32, i32, i32
  }
}

</mosaic_0001>

<bundles_post_ra>
// kernel: tpu_custom_call.1
= control target key start
LH: loop header
LB: loop body
LE: loop exit
PB: predicated region body
PF: predicated region fallthrough
CT: control target
= control target key end

     0   :  { %6 = vsyncpa [#allocation3], 0  ;;  %s481_s0 = inlined_call_operand.hbm [shape: f32[8,128], index: 0, kind: input, shape index: {}]   ;;  %s482_s1 = inlined_call_operand.hbm [shape: f32[16,128], index: 1, kind: output, shape index: {}]  }
   0x1   :  { %7 = vsyncpa [#allocation4], 0 }
   0x2   :  { %9 = vsyncpa [#allocation4 + $0x1], 0  ;;  %s351_s6 = smov 0   ;;  %s353_s7 = smov 0  }
   0x3   :  { %s355_s8 = smov 0   ;;  %s357_s9 = smov 0  }
   0x4 LB: > { %s372_s10 = sadd.s32 4294967295, %s337_s9   ;;  %s183_s11 = sadd.s32 4294967294, %s337_s9   ;;  %s337_s9 = sphi %s357_s9, %s498_s9   ;;  %s333_s8 = sphi %s355_s8, %s497_s8   ;;  %s329_s7 = sphi %s353_s7, %s496_s7   ;;  %s325_s6 = sphi %s351_s6, %s495_s6  }
   0x5   : > { %s376_s12 = sadd.s32 1, %s337_s9   ;;  %s43_s13 = sadd.s32 1, %s333_s8 }
   0x6   : > { %s40_s14 = ssub.s32 %s337_s9, %s376_s12  ;;  %p53_p0 = scmp.ne.s32.totalorder %s333_s8, %s329_s7 }
   0x7   : > { %p41_p1 = scmp.eq.s32.totalorder %s40_s14, 0  ;;  %p54_p2 = scmp.eq.s32.totalorder %s372_s10, 1 }
   0x8   : > { %p59_p3 = scmp.ne.s32.totalorder %s329_s7, %s325_s6  ;;  %p60_p4 = scmp.eq.s32.totalorder %s183_s11, 1 }
   0x9   : > { %s387_s15 = scalar_select %p41_p1, %s333_s8, %s43_s13  }
   0xa   : > { %p389_p5 = por %p54_p2, %p53_p0  ;;  %p393_p6 = por %p60_p4, %p59_p3 }
   0xb   : > { %p184_p7 = scmp.ge.s32.totalorder %s337_s9, 1  ;;  %p67_p8 = scmp.lt.s32.totalorder %s337_s9, 3 }
   0xc   : > { %s486_s16 = scalar_select %p389_p5, 1, 0 }
   0xd   : > { %s487_s17 = scalar_select %p393_p6, 1, 0 }
   0xe   : > { %p483_p9 = scmp.eq.s32.totalorder %s372_s10, 0  ;;  %p400_p10 = pnand %p184_p7, %p67_p8 }
   0xf   : > { %s339_s19 = smov [#allocation2]   ;;  %s243_s24 = scalar_lea.hbm %s481_s0, 128 }
  0x10   : > { %s488_s18 = scalar_select %p400_p10, 1, 0 }
  0x11   : > { %s80_s20 = sshll.u32 %s339_s19, 4  ;;  %p199_p11 = pneg %p400_p10  ;;  %s81_s20 = int_to_ptr.vmem [resolvable:$true] %s80_s20 }
  0x12   : > { %p244_p13 = scmp.ne.s32.totalorder %s481_s0, %s243_s24  ;;  %p250_p3 = scmp.lt.u32.totalorder %s243_s24, %s481_s0 }
  0x13   : > { %p408_p12 = pnand %p483_p9, %p199_p11 }
  0x15   : > { %p245_p0 = pneg %p408_p12 }
  0x17   : > { %p246_p1 = pnand %p245_p0, %p244_p13 }
  0x19   : > { %p247_p2 = pneg %p246_p1 }
  0x1b   : > { %p252_p4 = pnand %p250_p3, %p247_p2 }
  0x1d   : > { %255 = shalt.err (!%p252_p4)
}
  0x1e   : > { %s256_s29 = scalar_lea.vmem %s81_s20, 128  ;;  %p264_p9 = scmp.lt.s32.totalorder %s81_s20, %s81_s20 }
  0x1f   : > { %p257_p7 = scmp.ne.s32.totalorder %s81_s20, %s256_s29  ;;  %p265_p6 = scmp.lt.s32.totalorder %s256_s29, %s256_s29 }
  0x21   : > { %p259_p8 = pnand %p257_p7, %p245_p0  ;;  %p266_p5 = por %p265_p6, %p264_p9 }
  0x23   : > { %p260_p11 = pneg %p259_p8 }
  0x25   : > { %p267_p10 = pnand %p266_p5, %p260_p11 }
  0x27   : > { %270 = shalt.err (!%p267_p10)
}
  0x28   : > { %202 = dma.hbm_to_vmem [thread:$0]  (!%p408_p12), %s481_s0, 128, %s81_s20, [#allocation3]  }
  0x29   : > { %p490_p13 = scmp.ne.s32.totalorder %s488_s18, 0 }
  0x2a   : > { %p491_p1 = scmp.eq.s32.totalorder (!%p490_p13), %s372_s10, 0 }
  0x2b   : > { %93 = sbr.rel (%p490_p13) target bundleno = 77 (0x4d), region = 24 }
  0x32   : > { %316 = dma.done.wait (%p491_p1), [#allocation3], 128   ;;  %p492_p0 = pmov %p491_p1 }
  0x33   : > { %s105_s3 = sand.u32 1, %s329_s7   ;;  %s190_s13 = sshll.u32 %s372_s10, 7  ;;  %v108_v0 = vld [vmem:[#allocation2] sm:$0xff] }
  0x34   : > { %318 = vsyncadd (%p492_p0), [#allocation3], 4294967168  ;;  %s188_s4 = sshll.u32 %s105_s3, 3  ;;  %s441_s18 = scalar_lea.hbm %s482_s1, %s190_s13 }
  0x35   : > { %s107_s5 = scalar_lea.vmem [#allocation5], %s188_s4  ;;  %s111_s20 = scalar_lea.sflag [#allocation4], %s105_s3 }
  0x36   : > { %s124_s11 = sshll.u32 %s107_s5, 4  ;;  %109 = vst [vmem:[%s107_s5] sm:$0xff] %v108_v0  ;;  %p493_p6 = scmp.ne.s32.totalorder %s486_s16, 0  ;;  %s436_s11 = int_to_ptr.vmem [resolvable:$true] %s124_s11 }
  0x37   : > { %s271_s21 = scalar_lea.vmem %s436_s11, 128  ;;  %s340_s22 = smov [#allocation5]  }
  0x38   : > { %p272_p5 = scmp.ne.s32.totalorder %s436_s11, %s271_s21  ;;  %s275_s10 = sshll.u32 %s340_s22, 4  ;;  %s276_s10 = int_to_ptr.vmem [resolvable:$false] %s275_s10 }
  0x39   : > { %s277_s23 = scalar_lea.vmem %s276_s10, 256  ;;  %p278_p12 = scmp.lt.s32.totalorder %s436_s11, %s276_s10 }
  0x3a   : > { %p273_p9 = pnand %p272_p5, %p493_p6  ;;  %p279_p2 = scmp.lt.s32.totalorder %s277_s23, %s271_s21 }
  0x3c   : > { %p274_p10 = pneg %p273_p9  ;;  %p280_p3 = por %p279_p2, %p278_p12 }
  0x3e   : > { %p281_p4 = pnand %p280_p3, %p274_p10 }
  0x40   : > { %284 = shalt.err (!%p281_p4)
}
  0x41   : > { %s285_s24 = scalar_lea.hbm %s441_s18, 128  ;;  %s289_s27 = scalar_lea.hbm %s482_s1, 256 }
  0x42   : > { %p286_p7 = scmp.ne.s32.totalorder %s441_s18, %s285_s24  ;;  %p290_p13 = scmp.lt.u32.totalorder %s441_s18, %s482_s1 }
  0x43   : > { %p291_p1 = scmp.lt.u32.totalorder %s289_s27, %s285_s24  ;;  %p293_p5 = scmp.lt.u32.totalorder %s285_s24, %s441_s18 }
  0x44   : > { %p287_p8 = pnand %p286_p7, %p493_p6 }
  0x45   : > { %p292_p0 = por %p291_p1, %p290_p13 }
  0x46   : > { %p288_p11 = pneg %p287_p8 }
  0x47   : > { %p294_p9 = por %p293_p5, %p292_p0 }
  0x49   : > { %p295_p10 = pnand %p294_p9, %p288_p11 }
  0x4b   : > { %298 = shalt.err (!%p295_p10)
}
  0x4c   : > { %197 = dma.vmem_to_hbm [thread:$0]  (%p493_p6), %s436_s11, 128, %s441_s18, %s111_s20  }
  0x4d PF: > { %p209_p12 = scmp.ge.s32.totalorder %s337_s9, 2  ;;  %s136_s30 = sand.u32 1, %s325_s6  }
  0x4e   : > { %p494_p2 = scmp.ne.s32.totalorder %s487_s17, 0  ;;  %s137_s2 = scalar_lea.sflag [#allocation4], %s136_s30 }
  0x50   : > { %p204_p3 = pnand %p209_p12, %p494_p2 }
  0x52   : > { %320 = dma.done.wait (!%p204_p3), %s137_s2, 128  }
  0x53   : > { %322 = vsyncadd (!%p204_p3), %s137_s2, 4294967168  ;;  %p12_p4 = scmp.ge.s32.totalorder %s376_s12, 4   ;;  %s495_s6 = smov %s329_s7 }
  0x54   : > { %s496_s7 = smov %s333_s8  ;;  %s497_s8 = smov %s387_s15 }
  0x55   : > { %s498_s9 = smov %s376_s12  ;;  %14 = sbr.rel (!%p12_p4) target bundleno = 4 (0x4), region = 61 }
  0x5c   :  { %142 = vsyncpa [#allocation3], 1 }
  0x5d   :  { %144 = vsyncpa [#allocation3 + $0x1], 1 }
  0x5e   :  { %145 = vsyncpa [#allocation4], 1 }
  0x5f   :  { %147 = vsyncpa [#allocation4 + $0x1], 1 }

// kernel: tpu_custom_call.1
= control target key start
LH: loop header
LB: loop body
LE: loop exit
PB: predicated region body
PF: predicated region fallthrough
CT: control target
= control target key end

     0   :  { %s3854_s0 = inlined_call_operand.hbm [shape: f32[2,16,128], index: 0, kind: input, shape index: {}]   ;;  %s3855_s1 = inlined_call_operand.hbm [shape: f32[1,128], index: 1, kind: input, shape index: {}]   ;;  %s3856_s2 = inlined_call_operand.hbm [shape: f32[1,128], index: 2, kind: input, shape index: {}]   ;;  %s3857_s3 = inlined_call_operand.hbm [shape: bf16[128,384], index: 3, kind: input, shape index: {}]   ;;  %s3858_s4 = inlined_call_operand.vmem [shape: f32[1,384], index: 4, kind: input, shape index: {}]   ;;  %s3859_s5 = inlined_call_operand.hbm [shape: bf16[128,128], index: 5, kind: input, shape index: {}]   ;;  %s3860_s6 = inlined_call_operand.vmem [shape: f32[1,128], index: 6, kind: input, shape index: {}]   ;;  %s3861_s7 = inlined_call_operand.vmem [shape: f32[1,128], index: 7, kind: input, shape index: {}]   ;;  %s3862_s8 = inlined_call_operand.vmem [shape: f32[1,128], index: 8, kind: input, shape index: {}]   ;;  %s3863_s9 = inlined_call_operand.hbm [shape: bf16[128,512], index: 9, kind: input, shape index: {}]   ;;  %s3864_s10 = inlined_call_operand.vmem [shape: f32[1,512], index: 10, kind: input, shape index: {}]   ;;  %s3865_s11 = inlined_call_operand.hbm [shape: bf16[512,128], index: 11, kind: input, shape index: {}]   ;;  %s3866_s12 = inlined_call_operand.vmem [shape: f32[1,128], index: 12, kind: input, shape index: {}]   ;;  %s3867_s13 = inlined_call_operand.vmem [shape: f32[1,128], index: 13, kind: input, shape index: {}]   ;;  %s3868_s14 = inlined_call_operand.vmem [shape: f32[1,128], index: 14, kind: input, shape index: {}]   ;;  %s3869_s15 = inlined_call_operand.hbm [shape: f32[2,16,128], index: 15, kind: output, shape index: {}]  }
   0x1   :  { %3874 = sst [smem:[#allocation20_spill]] %s3855_s1 }
   0x2   :  { %3875 = sst [smem:[#allocation21_spill]] %s3857_s3 }
   0x3   :  { %3876 = sst [smem:[#allocation22_spill]] %s3861_s7 }
   0x4   :  { %3877 = sst [smem:[#allocation23_spill]] %s3862_s8 }
   0x5   :  { %3878 = sst [smem:[#allocation24_spill]] %s3864_s10 }
   0x6   :  { %3879 = sst [smem:[#allocation25_spill]] %s3866_s12 }
   0x7   :  { %3880 = sst [smem:[#allocation26_spill]] %s3869_s15 }
   0x8   :  { %20 = vsyncpa [#allocation3], 0 }
   0x9   :  { %22 = vsyncpa [#allocation3 + $0x1], 0 }
   0xa   :  { %23 = vsyncpa [#allocation6], 0 }
   0xb   :  { %24 = vsyncpa [#allocation9], 0 }
   0xc   :  { %25 = vsyncpa [#allocation12], 0 }
   0xd   :  { %26 = vsyncpa [#allocation4], 0 }
   0xe   :  { %28 = vsyncpa [#allocation4 + $0x1], 0  ;;  %s3374_s18 = smov 0   ;;  %s3376_s19 = smov 0  }
   0xf   :  { %s3378_s20 = smov 0   ;;  %s3380_s13 = smov 0  }
  0x10 LB: > { %s3269_s14 = smov [#allocation5]   ;;  %s3395_s22 = sadd.s32 4294967295, %s3267_s13   ;;  %s3267_s13 = sphi %s3380_s13, %s3910_s13   ;;  %s3263_s20 = sphi %s3378_s20, %s3909_s20   ;;  %s3259_s19 = sphi %s3376_s19, %s3908_s19   ;;  %s3255_s18 = sphi %s3374_s18, %s3907_s18  }
  0x11   : > { %s398_s21 = sshll.u32 %s3269_s14, 4  ;;  %p2386_p0 = scmp.ge.s32.totalorder %s3267_s13, 1  ;;  %s3400_s21 = int_to_ptr.vmem [resolvable:$true] %s398_s21 }
  0x12   : > { %p3871_p1 = scmp.eq.s32.totalorder %s3395_s22, 0  ;;  %p385_p2 = scmp.lt.s32.totalorder %s3267_s13, 3 }
  0x13   : > { %s3270_s24 = smov [#allocation8]   ;;  %s3271_s27 = smov [#allocation11]  }
  0x14   : > { %p3402_p3 = pnand %p2386_p0, %p385_p2  ;;  %s419_s25 = sshll.u32 %s3270_s24, 4  ;;  %s3409_s25 = int_to_ptr.vmem [resolvable:$true] %s419_s25 }
  0x15   : > { %s457_s28 = sshll.u32 %s3271_s27, 4  ;;  %s3883_s1 = sld [smem:[#allocation20_spill]]  ;;  %s3417_s28 = int_to_ptr.vmem [resolvable:$true] %s457_s28 }
  0x16   : > { %s3881_s23 = scalar_select %p3402_p3, 1, 0 }
  0x17   : > { %p2717_p5 = pneg %p3402_p3 }
  0x19   : > { %p3413_p6 = pnand %p2717_p5, %p3871_p1 }
  0x1b   : > { %s2991_s16 = scalar_lea.hbm %s3883_s1, 16  ;;  %p3427_p8 = pneg %p3413_p6 }
  0x1c   : > { %p2992_p7 = scmp.ne.s32.totalorder %s3883_s1, %s2991_s16  ;;  %p2998_p11 = scmp.lt.u32.totalorder %s2991_s16, %s3883_s1 }
  0x1e   : > { %p2994_p9 = pnand %p3427_p8, %p2992_p7 }
  0x20   : > { %p2995_p10 = pneg %p2994_p9 }
  0x22   : > { %p3000_p12 = pnand %p2998_p11, %p2995_p10 }
  0x24   : > { %3003 = shalt.err (!%p3000_p12)
}
  0x25   : > { %s3004_s29 = scalar_lea.vmem %s3400_s21, 16  ;;  %s3011_s30 = scalar_lea.vmem %s3400_s21, 32 }
  0x26   : > { %p3005_p13 = scmp.ne.s32.totalorder %s3400_s21, %s3004_s29  ;;  %p3012_p5 = scmp.lt.s32.totalorder %s3400_s21, %s3400_s21 }
  0x27   : > { %p3013_p7 = scmp.lt.s32.totalorder %s3011_s30, %s3004_s29 }
  0x28   : > { %p3007_p0 = pnand %p3005_p13, %p3427_p8 }
  0x29   : > { %p3014_p9 = por %p3013_p7, %p3012_p5 }
  0x2a   : > { %p3008_p2 = pneg %p3007_p0 }
  0x2c   : > { %p3015_p4 = pnand %p3014_p9, %p3008_p2 }
  0x2e   : > { %3018 = shalt.err (!%p3015_p4)
}
  0x2f   : > { %2720 = dma.hbm_to_vmem [thread:$0]  (!%p3413_p6), %s3883_s1, 16, %s3400_s21, [#allocation6]  }
  0x30   : > { %s3885_s3 = sld [smem:[#allocation21_spill]] }
  0x36   : > { %s3019_s27 = scalar_lea.hbm %s3885_s3, 3072 }
  0x37   : > { %p3020_p10 = scmp.ne.s32.totalorder %s3885_s3, %s3019_s27  ;;  %p3026_p4 = scmp.lt.u32.totalorder %s3019_s27, %s3885_s3 }
  0x39   : > { %p3022_p11 = pnand %p3020_p10, %p3427_p8 }
  0x3b   : > { %p3023_p12 = pneg %p3022_p11 }
  0x3d   : > { %p3028_p13 = pnand %p3026_p4, %p3023_p12 }
  0x3f   : > { %3031 = shalt.err (!%p3028_p13)
}
  0x40   : > { %s3032_s21 = scalar_lea.vmem %s3409_s25, 3072  ;;  %p3040_p7 = scmp.lt.s32.totalorder %s3409_s25, %s3409_s25 }
  0x41   : > { %p3033_p0 = scmp.ne.s32.totalorder %s3409_s25, %s3032_s21  ;;  %p3041_p9 = scmp.lt.s32.totalorder %s3032_s21, %s3032_s21 }
  0x43   : > { %p3035_p2 = pnand %p3033_p0, %p3427_p8  ;;  %p3042_p10 = por %p3041_p9, %p3040_p7 }
  0x45   : > { %p3036_p5 = pneg %p3035_p2 }
  0x47   : > { %p3043_p11 = pnand %p3042_p10, %p3036_p5 }
  0x49   : > { %3046 = shalt.err (!%p3043_p11)
}
  0x4a   : > { %s3272_s10 = smov 192   ;;  %s3273_s12 = smov 12  }
  0x4b   : > { %2726 = dma.hbm_to_vmem [thread:$0]  (!%p3413_p6), %s3885_s3, 3072, %s3409_s25, [#allocation9], %s3272_s10, %s3272_s10, %s3273_s12  }
  0x4c   : > { %s3047_s27 = scalar_lea.hbm %s3863_s9, 4096 }
  0x4d   : > { %p3048_p12 = scmp.ne.s32.totalorder %s3863_s9, %s3047_s27  ;;  %p3054_p0 = scmp.lt.u32.totalorder %s3047_s27, %s3863_s9 }
  0x4f   : > { %p3050_p4 = pnand %p3048_p12, %p3427_p8 }
  0x51   : > { %p3051_p13 = pneg %p3050_p4 }
  0x53   : > { %p3056_p2 = pnand %p3054_p0, %p3051_p13 }
  0x55   : > { %3059 = shalt.err (!%p3056_p2)
}
  0x56   : > { %s3060_s25 = scalar_lea.vmem %s3417_s28, 4096  ;;  %p3068_p10 = scmp.lt.s32.totalorder %s3417_s28, %s3417_s28 }
  0x57   : > { %p3061_p5 = scmp.ne.s32.totalorder %s3417_s28, %s3060_s25  ;;  %p3069_p11 = scmp.lt.s32.totalorder %s3060_s25, %s3060_s25 }
  0x59   : > { %p3063_p7 = pnand %p3061_p5, %p3427_p8  ;;  %p3070_p12 = por %p3069_p11, %p3068_p10 }
  0x5b   : > { %p3064_p9 = pneg %p3063_p7 }
  0x5d   : > { %p3071_p4 = pnand %p3070_p12, %p3064_p9 }
  0x5f   : > { %3074 = shalt.err (!%p3071_p4)
}
  0x60   : > { %s3274_s10 = smov 256   ;;  %s3275_s1 = smov 16  }
  0x61   : > { %2732 = dma.hbm_to_vmem [thread:$0]  (!%p3413_p6), %s3863_s9, 4096, %s3417_s28, [#allocation12], %s3274_s10, %s3274_s10, %s3275_s1  }
  0x62   : > { %s3276_s16 = smov [#allocation7]   ;;  %s3277_s14 = smov [#allocation10]  }
  0x63   : > { %s409_s17 = sshll.u32 %s3276_s16, 4  ;;  %s435_s27 = sshll.u32 %s3277_s14, 4  ;;  %s410_s17 = int_to_ptr.vmem [resolvable:$true] %s409_s17  ;;  %s436_s27 = int_to_ptr.vmem [resolvable:$true] %s435_s27 }
  0x64   : > { %s3075_s21 = scalar_lea.hbm %s3856_s2, 16 }
  0x65   : > { %p3076_p13 = scmp.ne.s32.totalorder %s3856_s2, %s3075_s21  ;;  %p3082_p5 = scmp.lt.u32.totalorder %s3075_s21, %s3856_s2 }
  0x67   : > { %p3078_p0 = pnand %p3076_p13, %p3427_p8 }
  0x69   : > { %p3079_p2 = pneg %p3078_p0 }
  0x6b   : > { %p3084_p7 = pnand %p3082_p5, %p3079_p2 }
  0x6d   : > { %3087 = shalt.err (!%p3084_p7)
}
  0x6e   : > { %s3088_s28 = scalar_lea.vmem %s410_s17, 16  ;;  %s3095_s10 = scalar_lea.vmem %s410_s17, 32 }
  0x6f   : > { %p3089_p9 = scmp.ne.s32.totalorder %s410_s17, %s3088_s28  ;;  %p3096_p12 = scmp.lt.s32.totalorder %s410_s17, %s410_s17 }
  0x70   : > { %p3097_p4 = scmp.lt.s32.totalorder %s3095_s10, %s3088_s28 }
  0x71   : > { %p3091_p10 = pnand %p3089_p9, %p3427_p8 }
  0x72   : > { %p3098_p1 = por %p3097_p4, %p3096_p12 }
  0x73   : > { %p3092_p11 = pneg %p3091_p10 }
  0x75   : > { %p3099_p3 = pnand %p3098_p1, %p3092_p11 }
  0x77   : > { %3102 = shalt.err (!%p3099_p3)
}
  0x78   : > { %2723 = dma.hbm_to_vmem [thread:$0]  (!%p3413_p6), %s3856_s2, 16, %s410_s17, [#allocation6]  }
  0x79   : > { %s3103_s12 = scalar_lea.hbm %s3859_s5, 1024 }
  0x7a   : > { %p3104_p13 = scmp.ne.s32.totalorder %s3859_s5, %s3103_s12  ;;  %p3110_p3 = scmp.lt.u32.totalorder %s3103_s12, %s3859_s5 }
  0x7c   : > { %p3106_p0 = pnand %p3104_p13, %p3427_p8 }
  0x7e   : > { %p3107_p1 = pneg %p3106_p0 }
  0x80   : > { %p3112_p2 = pnand %p3110_p3, %p3107_p1 }
  0x82   : > { %3115 = shalt.err (!%p3112_p2)
}
  0x83   : > { %s3116_s30 = scalar_lea.vmem %s436_s27, 1024  ;;  %p3124_p10 = scmp.lt.s32.totalorder %s436_s27, %s436_s27 }
  0x84   : > { %p3117_p5 = scmp.ne.s32.totalorder %s436_s27, %s3116_s30  ;;  %p3125_p11 = scmp.lt.s32.totalorder %s3116_s30, %s3116_s30 }
  0x86   : > { %p3119_p7 = pnand %p3117_p5, %p3427_p8  ;;  %p3126_p12 = por %p3125_p11, %p3124_p10 }
  0x88   : > { %p3120_p9 = pneg %p3119_p7 }
  0x8a   : > { %p3127_p4 = pnand %p3126_p12, %p3120_p9 }
  0x8c   : > { %3130 = shalt.err (!%p3127_p4)
}
  0x8d   : > { %s3278_s17 = smov 64   ;;  %s3279_s21 = smov 4  }
  0x8e   : > { %2729 = dma.hbm_to_vmem [thread:$0]  (!%p3413_p6), %s3859_s5, 1024, %s436_s27, [#allocation9], %s3278_s17, %s3278_s17, %s3279_s21  }
  0x8f   : > { %s3280_s10 = smov [#allocation13]   ;;  %s3131_s8 = scalar_lea.hbm %s3865_s11, 4096 }
  0x90   : > { %s473_s3 = sshll.u32 %s3280_s10, 4  ;;  %p3132_p13 = scmp.ne.s32.totalorder %s3865_s11, %s3131_s8  ;;  %s474_s3 = int_to_ptr.vmem [resolvable:$true] %s473_s3 }
  0x91   : > { %p3138_p3 = scmp.lt.u32.totalorder %s3131_s8, %s3865_s11 }
  0x92   : > { %p3134_p0 = pnand %p3132_p13, %p3427_p8 }
  0x94   : > { %p3135_p1 = pneg %p3134_p0 }
  0x96   : > { %p3140_p2 = pnand %p3138_p3, %p3135_p1 }
  0x98   : > { %3143 = shalt.err (!%p3140_p2)
}
  0x99   : > { %s3144_s27 = scalar_lea.vmem %s474_s3, 4096  ;;  %p3152_p10 = scmp.lt.s32.totalorder %s474_s3, %s474_s3 }
  0x9a   : > { %p3145_p5 = scmp.ne.s32.totalorder %s474_s3, %s3144_s27  ;;  %p3153_p11 = scmp.lt.s32.totalorder %s3144_s27, %s3144_s27 }
  0x9c   : > { %p3147_p7 = pnand %p3145_p5, %p3427_p8  ;;  %p3154_p12 = por %p3153_p11, %p3152_p10 }
  0x9e   : > { %p3148_p9 = pneg %p3147_p7 }
  0xa0   : > { %p3155_p4 = pnand %p3154_p12, %p3148_p9 }
  0xa2   : > { %3158 = shalt.err (!%p3155_p4)
}
  0xa3   : > { %2735 = dma.hbm_to_vmem [thread:$0]  (!%p3413_p6), %s3865_s11, 4096, %s474_s3, [#allocation12], %s3278_s17, %s3278_s17, %s3279_s21  }
  0xa4   : > { %s2385_s24 = sadd.s32 4294967294, %s3267_s13   ;;  %s3551_s26 = sadd.s32 1, %s3267_s13  }
  0xa5   : > { %s38_s25 = ssub.s32 %s3267_s13, %s3551_s26  ;;  %s41_s28 = sadd.s32 1, %s3263_s20 }
  0xa6   : > { %p39_p8 = scmp.eq.s32.totalorder %s38_s25, 0  ;;  %p48_p13 = scmp.ne.s32.totalorder %s3263_s20, %s3259_s19 }
  0xa7   : > { %p49_p0 = scmp.eq.s32.totalorder %s3267_s13, 0  ;;  %p54_p1 = scmp.ne.s32.totalorder %s3259_s19, %s3255_s18 }
  0xa8   : > { %s3562_s10 = scalar_select %p39_p8, %s3263_s20, %s41_s28  }
  0xa9   : > { %p3564_p3 = por %p49_p0, %p48_p13  ;;  %p3887_p2 = scmp.eq.s32.totalorder %s3395_s22, 0 }
  0xaa   : > { %p372_p5 = scmp.eq.s32.totalorder %s3395_s22, 1  ;;  %p378_p7 = scmp.eq.s32.totalorder %s2385_s24, 1 }
  0xab   : > { %p3570_p6 = por %p3887_p2, %p54_p1  ;;  %p2750_p9 = scmp.lt.s32.totalorder %s3267_s13, 2 }
  0xac   : > { %s496_s21 = sand.u32 1, %s3263_s20   ;;  %p3577_p10 = por %p372_p5, %p48_p13 }
  0xad   : > { %p3581_p11 = por %p378_p7, %p54_p1  ;;  %s2394_s8 = sshll.u32 %s496_s21, 4 }
  0xae   : > { %s3889_s3 = scalar_select %p3577_p10, 1, 0 }
  0xaf   : > { %s3890_s7 = scalar_select %p3581_p11, 1, 0 }
  0xb0   : > { %s2521_s12 = sshll.u32 %s3267_s13, 8  ;;  %s500_s27 = scalar_lea.vmem [#allocation2], %s2394_s8 }
  0xb1   : > { %s3589_s14 = scalar_lea.hbm %s3854_s0, %s2521_s12  ;;  %s507_s29 = sshll.u32 %s500_s27, 4  ;;  %s3591_s29 = int_to_ptr.vmem [resolvable:$true] %s507_s29 }
  0xb2   : > { %p3595_p12 = pnand %p2750_p9, %p3564_p3  ;;  %s3599_s24 = scalar_lea.sflag [#allocation3], %s496_s21 }
  0xb3   : > { %s3159_s25 = scalar_lea.hbm %s3589_s14, 256  ;;  %s3164_s1 = scalar_lea.hbm %s3854_s0, 512 }
  0xb4   : > { %p3160_p4 = scmp.ne.s32.totalorder %s3589_s14, %s3159_s25  ;;  %p3161_p8 = pneg %p3595_p12 }
  0xb5   : > { %p3165_p1 = scmp.lt.u32.totalorder %s3589_s14, %s3854_s0  ;;  %p3166_p3 = scmp.lt.u32.totalorder %s3164_s1, %s3159_s25 }
  0xb6   : > { %p3162_p13 = pnand %p3161_p8, %p3160_p4  ;;  %p3168_p5 = scmp.lt.u32.totalorder %s3159_s25, %s3589_s14 }
  0xb7   : > { %p3167_p2 = por %p3166_p3, %p3165_p1 }
  0xb8   : > { %p3163_p0 = pneg %p3162_p13 }
  0xb9   : > { %p3169_p7 = por %p3168_p5, %p3167_p2 }
  0xbb   : > { %p3170_p9 = pnand %p3169_p7, %p3163_p0 }
  0xbd   : > { %3173 = shalt.err (!%p3170_p9)
}
  0xbe   : > { %s3174_s21 = scalar_lea.vmem %s3591_s29, 256  ;;  %s3281_s16 = smov [#allocation2]  }
  0xbf   : > { %p3175_p4 = scmp.ne.s32.totalorder %s3591_s29, %s3174_s21  ;;  %s3179_s27 = sshll.u32 %s3281_s16, 4  ;;  %s3180_s27 = int_to_ptr.vmem [resolvable:$false] %s3179_s27 }
  0xc0   : > { %s3181_s28 = scalar_lea.vmem %s3180_s27, 512  ;;  %p3182_p10 = scmp.lt.s32.totalorder %s3591_s29, %s3180_s27 }
  0xc1   : > { %p3177_p13 = pnand %p3175_p4, %p3161_p8  ;;  %p3183_p1 = scmp.lt.s32.totalorder %s3181_s28, %s3174_s21 }
  0xc3   : > { %p3178_p11 = pneg %p3177_p13  ;;  %p3184_p3 = por %p3183_p1, %p3182_p10 }
  0xc5   : > { %p3185_p2 = pnand %p3184_p3, %p3178_p11 }
  0xc7   : > { %3188 = shalt.err (!%p3185_p2)
}
  0xc8   : > { %s3282_s25 = smov 128   ;;  %s3283_s8 = smov 8  }
  0xc9   : > { %2739 = dma.hbm_to_vmem [thread:$0]  (!%p3595_p12), %s3589_s14, 256, %s3591_s29, %s3599_s24, %s3282_s25, %s3282_s25, %s3283_s8  }
  0xca   : > { %p3892_p8 = scmp.ne.s32.totalorder %s3881_s23, 0 }
  0xcb   : > { %s3630_s1 = sand.u32 (!%p3892_p8), 1, %s3259_s19  }
  0xcc   : > { %519 = sbr.rel (%p3892_p8) target bundleno = 2676 (0xa74), region = 80  ;;  %s2398_s12 = sshll.u32 (!%p3892_p8), %s3630_s1, 4 }
  0xcd   : > { %s522_s15 = scalar_lea.sflag (!%p3892_p8), [#allocation3], %s3630_s1  ;;  %s3636_s21 = scalar_lea.vmem (!%p3892_p8), [#allocation2], %s2398_s12 }
  0xd3   : > { %3234 = dma.done.wait (%p3570_p6), %s522_s15, 256  }
  0xd4   : > { %3236 = vsyncadd (%p3570_p6), %s522_s15, 4294967040  ;;  %p3893_p10 = scmp.eq.s32.totalorder %s3395_s22, 0 }
  0xd6   : > { %3238 = dma.done.wait (%p3893_p10), [#allocation6], 32   ;;  %p3894_p11 = pmov %p3893_p10 }
  0xd7   : > { %p3895_p12 = pmov %p3893_p10 }
  0xd8   : > { %3240 = vsyncadd (%p3894_p11), [#allocation6], 4294967264 }
  0xd9   : > { %3242 = dma.done.wait (%p3895_p12), [#allocation9], 4096   ;;  %p3896_p0 = pmov %p3893_p10 }
  0xdb   : > { %3244 = vsyncadd (%p3896_p0), [#allocation9], 4294963200  ;;  %p3897_p5 = pmov %p3896_p0 }
  0xdc   : > { %p3898_p7 = pmov %p3896_p0 }
  0xdd   : > { %3246 = dma.done.wait (%p3897_p5), [#allocation12], 8192  }
  0xde   : > { %3248 = vsyncadd (%p3898_p7), [#allocation12], 4294959104  ;;  %v599_v0 = vld [vmem:[%s3636_s21] sm:$0xff]  ;;  %v600_v1 = vld [vmem:[%s3636_s21 + $0x8] sm:$0xff]  ;;  %v3284_v4 = vmov 0.0   ;;  %v3285_v30 = vmov 0   ;;  %v677_v53 = vlaneseq }
  0xdf   : > { %603 = vadd.xlane.f32.xlu0 %v599_v0  ;;  %v2813_v2 = vld [vmem:[#allocation8 + $0x4] ss:$12 sps:$4 sm:$0xff]   ;;  %v2815_v3 = vld [vmem:[#allocation8] ss:$12 sps:$4 sm:$0xff]   ;;  %2601 = vmatprep.subr.bf16.mxu1 %v3284_v4  ;;  %v2816_v5 = vld [vmem:[#allocation8 + $0x8] ss:$12 sps:$4 sm:$0xff]  }
  0xe0   : > { %v2817_v6 = vld [vmem:[#allocation8 + $0x1c] ss:$12 sps:$4 sm:$0xff]   ;;  %820 = vmatprep.subr.bf16.mxu0 %v2813_v2  ;;  %2602 = vmatpush3.bf16.msra.mxu1 %v2816_v5  ;;  %v2819_v15 = vld [vmem:[#allocation8 + $0x18] ss:$12 sps:$4 sm:$0xff]   ;;  %v2820_v16 = vld [vmem:[#allocation8 + $0x20] ss:$12 sps:$4 sm:$0xff]  }
  0xe1   : > { %821 = vmatpush1.bf16.msra.mxu0 %v2815_v3  ;;  %2603 = vmatprep.subr.bf16.mxu1 %v3284_v4  ;;  %v2821_v17 = vld [vmem:[#allocation8 + $0x34] ss:$12 sps:$4 sm:$0xff]   ;;  %v2823_v18 = vld [vmem:[#allocation8 + $0x30] ss:$12 sps:$4 sm:$0xff]   ;;  %v2824_v19 = vld [vmem:[#allocation8 + $0x38] ss:$12 sps:$4 sm:$0xff]  }
  0xe2   : > { %822 = vmatprep.subr.bf16.mxu0 %v2817_v6  ;;  %v2825_v20 = vld [vmem:[#allocation8 + $0x4c] ss:$12 sps:$4 sm:$0xff]   ;;  %v2827_v21 = vld [vmem:[#allocation8 + $0x48] ss:$12 sps:$4 sm:$0xff]   ;;  %v2828_v22 = vld [vmem:[#allocation8 + $0x50] ss:$12 sps:$4 sm:$0xff]   ;;  %852 = vmatprep.mubr.bf16.mxu0 %v3285_v30 }
  0xe3   : > { %605 = vadd.xlane.f32.xlu0 %v600_v1  ;;  %v2829_v23 = vld [vmem:[#allocation8 + $0x64] ss:$12 sps:$4 sm:$0xff]   ;;  %v2831_v24 = vld [vmem:[#allocation8 + $0x60] ss:$12 sps:$4 sm:$0xff]   ;;  %v2832_v25 = vld [vmem:[#allocation8 + $0x68] ss:$12 sps:$4 sm:$0xff]  }
  0xe4   : > { %2604 = vmatpush3.bf16.msra.mxu1 %v2820_v16  ;;  %v2833_v26 = vld [vmem:[#allocation8 + $0x7c] ss:$12 sps:$4 sm:$0xff]   ;;  %v2835_v27 = vld [vmem:[#allocation8 + $0x78] ss:$12 sps:$4 sm:$0xff]   ;;  %v2836_v28 = vld [vmem:[#allocation8 + $0x80] ss:$12 sps:$4 sm:$0xff]  }
  0xe5   : > { %823 = vmatpush1.bf16.msra.mxu0 %v2819_v15  ;;  %2605 = vmatprep.subr.bf16.mxu1 %v3284_v4  ;;  %v2837_v29 = vld [vmem:[#allocation8 + $0x94] ss:$12 sps:$4 sm:$0xff]   ;;  %vm3286_vm0 = vmmov 0   ;;  %v2839_v31 = vld [vmem:[#allocation8 + $0x90] ss:$12 sps:$4 sm:$0xff]   ;;  %v3684_v54 = vshrl.u32 %v677_v53, 7 }
  0xe6   : > { %824 = vmatprep.subr.bf16.mxu0 %v2821_v17  ;;  %2617 = vmatprep.mubr.msk.bf16.mxu1 %vm3286_vm0, %v3284_v4  ;;  %v2840_v32 = vld [vmem:[#allocation8 + $0x98] ss:$12 sps:$4 sm:$0xff]   ;;  %v2843_v34 = vld [vmem:[#allocation8 + $0xa8] ss:$12 sps:$4 sm:$0xff]   ;;  %v2844_v35 = vld [vmem:[#allocation8 + $0xb0] ss:$12 sps:$4 sm:$0xff]  }
  0xe7   : > { %v2841_v33 = vld [vmem:[#allocation8 + $0xac] ss:$12 sps:$4 sm:$0xff]   ;;  %v2406_v44 = vld [vmem:[#allocation5] ss:$0 sm:$0xff]  ;;  %v2407_v48 = vld [vmem:[#allocation7] ss:$0 sm:$0xff] }
  0xe8   : > { %2606 = vmatpush3.bf16.msra.mxu1 %v2824_v19  ;;  %v679_v55 = vsub.s32 0, %v3684_v54  ;;  %v675_v56 = vld [vmem:[%s3858_s4] sm:$0x7]  ;;  %v687_v57 = vsub.s32 2, %v3684_v54  ;;  %v683_v58 = vsub.s32 1, %v3684_v54  ;;  %vm942_vm1 = vcmask 261120  }
  0xe9   : > { %825 = vmatpush1.bf16.msra.mxu0 %v2823_v18  ;;  %2607 = vmatprep.subr.bf16.mxu1 %v3284_v4  ;;  %s3287_s14 = smov 96   ;;  %s3288_s29 = smov 32   ;;  %vm1390_vm4 = vcmask 523264   ;;  %vm1393_vm5 = vcmask 785408  }
  0xea   : > { %826 = vmatprep.subr.bf16.mxu0 %v2825_v20  ;;  %v680_v59 = vrot.slane %v675_v56, %v679_v55  ;;  %v688_v60 = vrot.slane %v675_v56, %v687_v57  ;;  %v684_v63 = vrot.slane %v675_v56, %v683_v58  ;;  %s3289_s30 = smov 64   ;;  %s3899_s25 = sld [smem:[#allocation22_spill]] }
  0xeb   : > { %s3902_s24 = sld [smem:[#allocation25_spill]]  ;;  %s595_s16 = scalar_lea.vmem [#allocation14], %s2398_s12 }
  0xec   : > { %2608 = vmatpush3.bf16.msra.mxu1 %v2828_v22  ;;  %s2255_s27 = sshll.u32 %s595_s16, 4  ;;  %s2522_s28 = sshll.u32 %s3395_s22, 8  ;;  %s3804_s27 = int_to_ptr.vmem [resolvable:$true] %s2255_s27 }
  0xed   : > { %827 = vmatpush1.bf16.msra.mxu0 %v2827_v21  ;;  %2609 = vmatprep.subr.bf16.mxu1 %v3284_v4  ;;  %s3903_s15 = sld [smem:[#allocation26_spill]]  ;;  %s2242_s12 = scalar_lea.sflag [#allocation4], %s3630_s1 }
  0xee   : > { %828 = vmatprep.subr.bf16.mxu0 %v2829_v23  ;;  %s3189_s23 = scalar_lea.vmem %s3804_s27, 256  ;;  %p3904_p9 = scmp.ne.s32.totalorder %s3889_s3, 0 }
  0xef   : > { %p3190_p6 = scmp.ne.s32.totalorder %s3804_s27, %s3189_s23  ;;  %s3291_s22 = smov [#allocation14]  }
  0xf0   : > { %2610 = vmatpush3.bf16.msra.mxu1 %v2832_v25  ;;  %s3193_s17 = sshll.u32 %s3291_s22, 4  ;;  %s3194_s17 = int_to_ptr.vmem [resolvable:$false] %s3193_s17 }
  0xf1   : > { %829 = vmatpush1.bf16.msra.mxu0 %v2831_v24  ;;  %2611 = vmatprep.subr.bf16.mxu1 %v3284_v4  ;;  %p3191_p4 = pnand %p3190_p6, %p3904_p9  ;;  %p3196_p1 = scmp.lt.s32.totalorder %s3804_s27, %s3194_s17 }
  0xf2   : > { %830 = vmatprep.subr.bf16.mxu0 %v2833_v26 }
  0xf3   : > { %p3192_p13 = pneg %p3191_p4 }
  0xf4   : > { %2612 = vmatpush3.bf16.msra.mxu1 %v2836_v28  ;;  %v937_v28 = vand.u32 127, %v677_v53 }
  0xf5   : > { %831 = vmatpush1.bf16.msra.mxu0 %v2835_v27  ;;  %2613 = vmatprep.subr.bf16.mxu1 %v3284_v4 }
  0xf6   : > { %832 = vmatprep.subr.bf16.mxu0 %v2837_v29  ;;  %v935_v29 = vadd.s32 8, %v3684_v54  ;;  %vm938_vm2 = vcmp.le.s32.totalorder %v937_v28, %v3684_v54 }
  0xf8   : > { %2614 = vmatpush3.bf16.msra.mxu1 %v2840_v32  ;;  %vm939_vm3 = vcmp.le.s32.totalorder %v937_v28, %v935_v29 }
  0xf9   : > { %833 = vmatpush1.bf16.msra.mxu0 %v2839_v31  ;;  %2615 = vmatprep.subr.bf16.mxu1 %v3284_v4  ;;  %v3290_v31 = vmov -1e+09  }
  0xfa   : > { %834 = vmatprep.subr.bf16.mxu0 %v2841_v33  ;;  %v940_v32 = vsel %vm938_vm2, 0.0, %v3290_v31 }
  0xfc   : > { %2616 = vmatpush3.bf16.msra.mxu1 %v2844_v35 }
  0xfd   : > { %835 = vmatpush1.bf16.msra.mxu0 %v2843_v34  ;;  %2621 = vmatprep.subr.bf16.mxu1 %v3284_v4  ;;  %v941_v34 = vsel %vm939_vm3, 0.0, %v3290_v31 }
  0xfe   : > { %2645 = vmatprep.subr.bf16.mxu0 %v3284_v4 }
 0x16c   : > { %v604_v7 = vpop.xlane.xlu0 %603 }
 0x16d   : > { %v608_v8 = vmul.f32 0.0078125, %v604_v7 }
 0x16f   : > { %v3658_v9 = vsub.f32 %v599_v0, %v608_v8 }
 0x170   : > { %v606_v10 = vpop.xlane.xlu0 %605 }
 0x171   : > { %v609_v11 = vmul.f32 0.0078125, %v606_v10  ;;  %v612_v12 = vmul.f32 %v3658_v9, %v3658_v9 }
 0x173   : > { %v3662_v13 = vsub.f32 %v600_v1, %v609_v11  ;;  %614 = vadd.xlane.f32.xlu1 %v612_v12 }
 0x175   : > { %v613_v14 = vmul.f32 %v3662_v13, %v3662_v13 }
 0x177   : > { %616 = vadd.xlane.f32.xlu1 %v613_v14 }
 0x200   : > { %v615_v36 = vpop.xlane.xlu1 %614 }
 0x201   : > { %v618_v37 = vmul.f32 0.0078125, %v615_v36 }
 0x203   : > { %v620_v38 = vadd.f32 1e-05, %v618_v37 }
 0x204   : > { %v617_v39 = vpop.xlane.xlu1 %616 }
 0x205   : > { %2933 = vrsqrt.f32 %v620_v38  ;;  %v619_v40 = vmul.f32 0.0078125, %v617_v39 }
 0x207   : > { %v621_v41 = vadd.f32 1e-05, %v619_v40 }
 0x209   : > { %2935 = vrsqrt.f32 %v621_v41 }
 0x20f   : > { %v2934_v42 = vpop.eup %2933 }
 0x210   : > { %v624_v43 = vmul.f32 %v2934_v42, %v3658_v9 }
 0x212   : > { %v632_v47 = vmul.f32 %v2406_v44, %v624_v43 }
 0x213   : > { %v2936_v45 = vpop.eup %2935 }
 0x214   : > { %v625_v46 = vmul.f32 %v2936_v45, %v3662_v13  ;;  %v640_v50 = vadd.f32 %v2407_v48, %v632_v47 }
 0x216   : > { %v633_v49 = vmul.f32 %v2406_v44, %v625_v46 }
 0x218   : > { %v641_v51 = vadd.f32 %v2407_v48, %v633_v49 }
 0x21a   : > { %v642_v52 = vpack.c.bf16 %v641_v51, %v640_v50 }
 0x21c   : > { %853 = vmatmul.mubr.bf16.vlgmr.msra.gmra.mrb[0].mxu0 %v642_v52  ;;  %2618 = vmatmul.mubr.bf16.vlgmr.msra.gmra.mrb[0].mxu1 %v642_v52 }
 0x21d   : > { %2623 = vmatprep.mubr.msk.bf16.mxu1 %vm3286_vm0, %v3284_v4  ;;  %2647 = vmatprep.mubr.msk.bf16.mxu0 %vm3286_vm0, %v3284_v4 }
 0x2ef   : > { %v854_v61 = vpop.f32.mrb[0].mxu0  ;;  %v897_v62 = vpop.f32.mrb[0].mxu1 }
 0x2f0   : > { %v855_v0 = vadd.f32 %v854_v61, %v680_v59  ;;  %v856_v1 = vpop.f32.mrb[1].mxu0  ;;  %v2619_v2 = vpop.f32.mrb[1].mxu1  ;;  %v898_v6 = vadd.f32 %v897_v62, %v688_v60 }
 0x2f1   : > { %v858_v3 = vpop.f32.mrb[2].mxu0  ;;  %v900_v5 = vpop.f32.mrb[2].mxu1  ;;  %v857_v11 = vadd.f32 %v856_v1, %v684_v63 }
 0x2f2   : > { %v859_v7 = vadd.f32 %v858_v3, %v680_v59  ;;  %v901_v8 = vadd.f32 %v900_v5, %v688_v60  ;;  %v860_v9 = vpop.f32.mrb[3].mxu0  ;;  %v2620_v10 = vpop.f32.mrb[3].mxu1  ;;  %v904_v13 = vmul.f32 0.17677669, %v855_v0 }
 0x2f3   : > { %v861_v12 = vadd.f32 %v860_v9, %v684_v63 }
 0x2f4   : > { %v905_v14 = vmul.f32 0.17677669, %v859_v7  ;;  %v3698_v15 = vpack.c.bf16 %v901_v8, %v898_v6 }
 0x2f5   : > { %v907_v16 = vpack.c.bf16 %v861_v12, %v857_v11 }
 0x2f6   : > { %v906_v17 = vpack.c.bf16 %v905_v14, %v904_v13  ;;  %2646 = vmatpush3.bf16.msra.mxu0 %v3698_v15 }
 0x2f7   : > { %917 = vrot.lane.b32.xlu0 %v907_v16, %s3287_s14  ;;  %v947_v18 = vsel %vm942_vm1, %v907_v16, 0  ;;  %2657 = vmatprep.subr.bf16.mxu0 %v3284_v4 }
 0x2f8   : > { %2622 = vmatpush3.bf16.xpose.msra.mxu1 %v947_v18  ;;  %910 = vrot.lane.b32.xlu1 %v906_v17, %s3287_s14 }
 0x2f9   : > { %2627 = vmatprep.subr.bf16.mxu1 %v3284_v4 }
 0x2fb   : > { %921 = vrot.lane.b32.xlu0 %v907_v16, %s3288_s29 }
 0x2fc   : > { %919 = vrot.lane.b32.xlu1 %v907_v16, %s3289_s30 }
 0x2ff   : > { %2624 = vmatmul.mubr.msk.bf16.vlgmr.msra.gmra.mrb[4].mxu1 %vm942_vm1, %v906_v17 }
 0x300   : > { %912 = vrot.lane.b32.xlu1 %v906_v17, %s3289_s30  ;;  %2629 = vmatprep.mubr.msk.bf16.mxu1 %vm3286_vm0, %v3284_v4 }
 0x304   : > { %914 = vrot.lane.b32.xlu1 %v906_v17, %s3288_s29 }
 0x369   : > { %v918_v19 = vpop.permute.xlu0 %917 }
 0x36a   : > { %v997_v20 = vsel %vm942_vm1, %v918_v19, 0  ;;  %v911_v21 = vpop.permute.xlu1 %910 }
 0x36b   : > { %2628 = vmatpush3.bf16.xpose.msra.mxu1 %v997_v20 }
 0x36c   : > { %2633 = vmatprep.subr.bf16.mxu1 %v3284_v4 }
 0x36d   : > { %v922_v24 = vpop.permute.xlu0 %921 }
 0x36e   : > { %v920_v22 = vpop.permute.xlu1 %919  ;;  %v1091_v26 = vsel %vm942_vm1, %v922_v24, 0 }
 0x36f   : > { %v1044_v23 = vsel %vm942_vm1, %v920_v22, 0 }
 0x372   : > { %2630 = vmatmul.mubr.msk.bf16.vlgmr.msra.gmra.mrb[8].mxu1 %vm942_vm1, %v911_v21  ;;  %v913_v25 = vpop.permute.xlu1 %912 }
 0x373   : > { %2634 = vmatpush3.bf16.xpose.msra.mxu1 %v1044_v23  ;;  %2635 = vmatprep.mubr.msk.bf16.mxu1 %vm3286_vm0, %v3284_v4 }
 0x374   : > { %2639 = vmatprep.subr.bf16.mxu1 %v3284_v4 }
 0x376   : > { %v915_v27 = vpop.permute.xlu1 %914 }
 0x37a   : > { %2636 = vmatmul.mubr.msk.bf16.vlgmr.msra.gmra.mrb[12].mxu1 %vm942_vm1, %v913_v25 }
 0x37b   : > { %2640 = vmatpush3.bf16.xpose.msra.mxu1 %v1091_v26  ;;  %2641 = vmatprep.mubr.msk.bf16.mxu1 %vm3286_vm0, %v3284_v4 }
 0x37c   : > { %2651 = vmatprep.subr.bf16.mxu1 %v3284_v4 }
 0x382   : > { %2642 = vmatmul.mubr.msk.bf16.vlgmr.msra.gmra.mrb[16].mxu1 %vm942_vm1, %v915_v27 }
 0x383   : > { %2653 = vmatprep.mubr.msk.bf16.mxu1 %vm3286_vm0, %v3284_v4 }
 0x3d2   : > { %v986_v33 = vpop.f32.mrb[4].mxu1 }
 0x3d3   : > { %v987_v35 = vadd.f32 %v986_v33, %v940_v32  ;;  %v2625_v36 = vpop.f32.mrb[5].mxu1 }
 0x3d4   : > { %v989_v37 = vpop.f32.mrb[6].mxu1 }
 0x3d5   : > { %v990_v38 = vadd.f32 %v989_v37, %v941_v34  ;;  %1134 = vmax.xlane.f32.xlu0 %v987_v35  ;;  %v2626_v39 = vpop.f32.mrb[7].mxu1 }
 0x3d7   : > { %1136 = vmax.xlane.f32.xlu1 %v990_v38 }
 0x445   : > { %v1033_v40 = vpop.f32.mrb[8].mxu1 }
 0x446   : > { %v1034_v41 = vadd.f32 %v1033_v40, %v940_v32  ;;  %v2631_v42 = vpop.f32.mrb[9].mxu1 }
 0x447   : > { %v1036_v43 = vpop.f32.mrb[10].mxu1 }
 0x448   : > { %1138 = vmax.xlane.f32.xlu0 %v1034_v41  ;;  %v2632_v44 = vpop.f32.mrb[11].mxu1  ;;  %v1037_v45 = vadd.f32 %v1036_v43, %v941_v34 }
 0x44c   : > { %1140 = vmax.xlane.f32.xlu0 %v1037_v45 }
 0x44d   : > { %v1080_v46 = vpop.f32.mrb[12].mxu1 }
 0x44e   : > { %v1081_v47 = vadd.f32 %v1080_v46, %v940_v32  ;;  %v2637_v48 = vpop.f32.mrb[13].mxu1 }
 0x44f   : > { %v1083_v49 = vpop.f32.mrb[14].mxu1 }
 0x450   : > { %v1084_v50 = vadd.f32 %v1083_v49, %v941_v34  ;;  %1142 = vmax.xlane.f32.xlu0 %v1081_v47  ;;  %v2638_v51 = vpop.f32.mrb[15].mxu1 }
 0x452   : > { %1144 = vmax.xlane.f32.xlu1 %v1084_v50 }
 0x455   : > { %v1127_v52 = vpop.f32.mrb[16].mxu1 }
 0x456   : > { %v1128_v53 = vadd.f32 %v1127_v52, %v940_v32  ;;  %v2643_v56 = vpop.f32.mrb[17].mxu1  ;;  %v2845_v52 = vld [vmem:[#allocation10] sm:$0xff]  }
 0x457   : > { %v1130_v59 = vpop.f32.mrb[18].mxu1 }
 0x458   : > { %1146 = vmax.xlane.f32.xlu0 %v1128_v53  ;;  %v2644_v60 = vpop.f32.mrb[19].mxu1  ;;  %v1131_v7 = vadd.f32 %v1130_v59, %v941_v34  ;;  %v2846_v59 = vld [vmem:[#allocation10 + $0x8] sm:$0xff]  }
 0x462   : > { %v1135_v61 = vpop.xlane.xlu0 %1134 }
 0x463   : > { %v1150_v62 = vsub.f32 %v987_v35, %v1135_v61  ;;  %927 = vrot.lane.b32.xlu1 %v3698_v15, %s3289_s30 }
 0x464   : > { %v1137_v63 = vpop.xlane.xlu1 %1136 }
 0x465   : > { %v1158_v0 = vmul.f32 1.442695, %v1150_v62  ;;  %v1151_v1 = vsub.f32 %v990_v38, %v1137_v63 }
 0x467   : > { %v1160_v2 = vmul.f32 1.442695, %v1151_v1  ;;  %2937 = vpow2.f32 %v1158_v0 }
 0x469   : > { %2939 = vpow2.f32 %v1160_v2 }
 0x46e   : > { %924 = vrot.lane.b32.xlu0 %v3698_v15, %s3287_s14 }
 0x471   : > { %v2938_v3 = vpop.eup %2937 }
 0x473   : > { %v2940_v5 = vpop.eup %2939 }
 0x474   : > { %v1190_v6 = vpack.c.bf16 %v2940_v5, %v2938_v3 }
 0x476   : > { %2648 = vmatmul.mubr.bf16.vlgmr.msra.gmra.mrb[4].mxu0 %v1190_v6 }
 0x477   : > { %2659 = vmatprep.mubr.msk.bf16.mxu0 %vm3286_vm0, %v3284_v4 }
 0x487   : > { %1148 = vmax.xlane.f32.xlu1 %v1131_v7 }
 0x498   : > { %930 = vrot.lane.b32.xlu1 %v3698_v15, %s3288_s29 }
 0x4d5   : > { %v1139_v8 = vpop.xlane.xlu0 %1138 }
 0x4d6   : > { %v1152_v9 = vsub.f32 %v1034_v41, %v1139_v8  ;;  %v2847_v8 = vld [vmem:[#allocation10 + $0x10] sm:$0xff]  }
 0x4d8   : > { %v1162_v10 = vmul.f32 1.442695, %v1152_v9 }
 0x4d9   : > { %v1141_v11 = vpop.xlane.xlu0 %1140 }
 0x4da   : > { %2941 = vpow2.f32 %v1162_v10  ;;  %v1153_v12 = vsub.f32 %v1037_v45, %v1141_v11 }
 0x4dc   : > { %v1164_v13 = vmul.f32 1.442695, %v1153_v12 }
 0x4dd   : > { %v1143_v14 = vpop.xlane.xlu0 %1142 }
 0x4de   : > { %2943 = vpow2.f32 %v1164_v13  ;;  %v1154_v16 = vsub.f32 %v1081_v47, %v1143_v14 }
 0x4df   : > { %v1145_v17 = vpop.xlane.xlu1 %1144 }
 0x4e0   : > { %v1166_v18 = vmul.f32 1.442695, %v1154_v16  ;;  %v1155_v19 = vsub.f32 %v1084_v50, %v1145_v17 }
 0x4e2   : > { %2945 = vpow2.f32 %v1166_v18  ;;  %v1168_v20 = vmul.f32 1.442695, %v1155_v19  ;;  %v2848_v18 = vld [vmem:[#allocation10 + $0x18] sm:$0xff]  }
 0x4e3   : > { %v928_v21 = vpop.permute.xlu1 %927 }
 0x4e4   : > { %v2942_v22 = vpop.eup %2941  ;;  %2947 = vpow2.f32 %v1168_v20  ;;  %2658 = vmatpush3.bf16.msra.mxu0 %v928_v21  ;;  %v2849_v20 = vld [vmem:[#allocation10 + $0x20] sm:$0xff]   ;;  %v2850_v21 = vld [vmem:[#allocation10 + $0x28] sm:$0xff]  }
 0x4e5   : > { %v1147_v15 = vpop.xlane.xlu0 %1146  ;;  %1178 = vadd.xlane.f32.xlu1 %v2942_v22  ;;  %2669 = vmatprep.subr.bf16.mxu0 %v3284_v4 }
 0x4e6   : > { %v1156_v23 = vsub.f32 %v1128_v53, %v1147_v15  ;;  %v2852_v15 = vld [vmem:[#allocation10 + $0x38] sm:$0xff]  }
 0x4e8   : > { %v2944_v24 = vpop.eup %2943  ;;  %v1170_v25 = vmul.f32 1.442695, %v1156_v23 }
 0x4e9   : > { %1180 = vadd.xlane.f32.xlu0 %v2944_v24  ;;  %v925_v26 = vpop.permute.xlu0 %924  ;;  %v1191_v27 = vpack.c.bf16 %v2944_v24, %v2942_v22  ;;  %v2851_v22 = vld [vmem:[#allocation10 + $0x30] sm:$0xff]  }
 0x4ea   : > { %2949 = vpow2.f32 %v1170_v25  ;;  %2652 = vmatpush3.bf16.msra.mxu1 %v925_v26 }
 0x4eb   : > { %2663 = vmatprep.subr.bf16.mxu1 %v3284_v4 }
 0x4ec   : > { %v2946_v28 = vpop.eup %2945 }
 0x4ed   : > { %1182 = vadd.xlane.f32.xlu0 %v2946_v28  ;;  %2654 = vmatmul.mubr.bf16.vlgmr.msra.gmra.mrb[20].mxu1 %v1191_v27 }
 0x4ee   : > { %v2948_v29 = vpop.eup %2947  ;;  %2665 = vmatprep.mubr.msk.bf16.mxu1 %vm3286_vm0, %v3284_v4 }
 0x4ef   : > { %v1192_v31 = vpack.c.bf16 %v2948_v29, %v2946_v28 }
 0x4f1   : > { %2660 = vmatmul.mubr.bf16.vlgmr.msra.gmra.mrb[8].mxu0 %v1192_v31  ;;  %1184 = vadd.xlane.f32.xlu0 %v2948_v29 }
 0x4f2   : > { %2685 = vmatprep.mubr.msk.bf16.mxu0 %vm3286_vm0, %v3284_v4  ;;  %2670 = vmatpush3.bf16.msra.mxu0 %v2845_v52  ;;  %v2861_v52 = vld [vmem:[#allocation11 + $0x24] ss:$16 sps:$4 sm:$0xff]  }
 0x4f3   : > { %2671 = vmatprep.subr.bf16.mxu0 %v3284_v4 }
 0x4f4   : > { %v2950_v32 = vpop.eup %2949 }
 0x4f5   : > { %1186 = vadd.xlane.f32.xlu1 %v2950_v32 }
 0x4f6   : > { %2672 = vmatpush3.bf16.msra.mxu0 %v2846_v59  ;;  %v2862_v59 = vld [vmem:[#allocation11 + $0x28] ss:$16 sps:$4 sm:$0xff]  }
 0x4f7   : > { %2673 = vmatprep.subr.bf16.mxu0 %v3284_v4 }
 0x4f9   : > { %1174 = vadd.xlane.f32.xlu1 %v2938_v3 }
 0x4fa   : > { %2674 = vmatpush3.bf16.msra.mxu0 %v2847_v8  ;;  %v2868_v8 = vld [vmem:[#allocation11 + $0x48] ss:$16 sps:$4 sm:$0xff]  }
 0x4fb   : > { %2675 = vmatprep.subr.bf16.mxu0 %v3284_v4 }
 0x4fe   : > { %2676 = vmatpush3.bf16.msra.mxu0 %v2848_v18  ;;  %v2885_v18 = vld [vmem:[#allocation11 + $0xa4] ss:$16 sps:$4 sm:$0xff]  }
 0x4ff   : > { %2677 = vmatprep.subr.bf16.mxu0 %v3284_v4 }
 0x502   : > { %2678 = vmatpush3.bf16.msra.mxu0 %v2849_v20  ;;  %v2883_v20 = vld [vmem:[#allocation11 + $0xa0] ss:$16 sps:$4 sm:$0xff]  }
 0x503   : > { %2679 = vmatprep.subr.bf16.mxu0 %v3284_v4 }
 0x506   : > { %2680 = vmatpush3.bf16.msra.mxu0 %v2850_v21  ;;  %v2886_v21 = vld [vmem:[#allocation11 + $0xa8] ss:$16 sps:$4 sm:$0xff]  }
 0x507   : > { %2681 = vmatprep.subr.bf16.mxu0 %v3284_v4 }
 0x50a   : > { %2682 = vmatpush3.bf16.msra.mxu0 %v2851_v22  ;;  %v2891_v22 = vld [vmem:[#allocation11 + $0xc4] ss:$16 sps:$4 sm:$0xff]  }
 0x50b   : > { %2683 = vmatprep.subr.bf16.mxu0 %v3284_v4 }
 0x50e   : > { %2684 = vmatpush3.bf16.msra.mxu0 %v2852_v15  ;;  %v2894_v15 = vld [vmem:[#allocation11 + $0xcc] ss:$16 sps:$4 sm:$0xff]  }
 0x514   : > { %v1149_v33 = vpop.xlane.xlu1 %1148 }
 0x515   : > { %v1157_v34 = vsub.f32 %v1131_v7, %v1149_v33 }
 0x517   : > { %v1172_v35 = vmul.f32 1.442695, %v1157_v34 }
 0x518   : > { %v931_v36 = vpop.permute.xlu1 %930 }
 0x519   : > { %2951 = vpow2.f32 %v1172_v35  ;;  %2664 = vmatpush3.bf16.msra.mxu1 %v931_v36 }
 0x523   : > { %v2952_v37 = vpop.eup %2951 }
 0x524   : > { %1188 = vadd.xlane.f32.xlu0 %v2952_v37  ;;  %v1193_v38 = vpack.c.bf16 %v2952_v37, %v2950_v32 }
 0x526   : > { %2666 = vmatmul.mubr.bf16.vlgmr.msra.gmra.mrb[24].mxu1 %v1193_v38  ;;  %v2436_v38 = vld [vmem:[%s3860_s6] ss:$0 sm:$0xff] }
 0x527   : > { %1798 = vmatprep.mubr.bf16.mxu1 %v3285_v30 }
 0x528   : > { %1176 = vadd.xlane.f32.xlu0 %v2940_v5 }
 0x549   : > { %v1228_v39 = vpop.f32.mrb[4].mxu0 }
 0x54a   : > { %v2649_v40 = vpop.f32.mrb[5].mxu0 }
 0x54b   : > { %v1231_v41 = vpop.f32.mrb[6].mxu0 }
 0x54c   : > { %v2650_v42 = vpop.f32.mrb[7].mxu0 }
 0x572   : > { %v1179_v44 = vpop.xlane.xlu1 %1178 }
 0x576   : > { %v1181_v43 = vpop.xlane.xlu0 %1180 }
 0x57a   : > { %v1183_v45 = vpop.xlane.xlu0 %1182 }
 0x57e   : > { %v1185_v47 = vpop.xlane.xlu0 %1184 }
 0x582   : > { %v1187_v46 = vpop.xlane.xlu1 %1186 }
 0x586   : > { %v1175_v48 = vpop.xlane.xlu1 %1174 }
 0x587   : > { %2953 = vrcp.f32 %v1175_v48 }
 0x591   : > { %v2954_v51 = vpop.eup %2953 }
 0x592   : > { %v1366_v62 = vmul.f32 %v2954_v51, %v1228_v39  ;;  %v2858_v51 = vld [vmem:[#allocation11 + $0xc] ss:$16 sps:$4 sm:$0xff]  }
 0x593   : > { %1809 = vmatprep.subr.bf16.mxu0 %v2858_v51  ;;  %v2905_v51 = vld [vmem:[#allocation13 + $0x48] sm:$0xff]  }
 0x5b1   : > { %v1189_v49 = vpop.xlane.xlu0 %1188 }
 0x5b5   : > { %v1177_v50 = vpop.xlane.xlu0 %1176 }
 0x5b6   : > { %2955 = vrcp.f32 %v1177_v50  ;;  %v2856_v50 = vld [vmem:[#allocation11 + $0x8] ss:$16 sps:$4 sm:$0xff]  }
 0x5b7   : > { %2957 = vrcp.f32 %v1179_v44 }
 0x5b8   : > { %2959 = vrcp.f32 %v1181_v43  ;;  %v2989_v43 = vld [vmem:[%s3636_s21] sm:$0xff] }
 0x5b9   : > { %2961 = vrcp.f32 %v1183_v45 }
 0x5ba   : > { %2963 = vrcp.f32 %v1185_v47  ;;  %v2990_v47 = vld [vmem:[%s3636_s21 + $0x8] sm:$0xff]  ;;  %s3900_s21 = sld [smem:[#allocation23_spill]] }
 0x5bb   : > { %2965 = vrcp.f32 %v1187_v46 }
 0x5bc   : > { %2967 = vrcp.f32 %v1189_v49  ;;  %v2855_v49 = vld [vmem:[#allocation11 + $0x4] ss:$16 sps:$4 sm:$0xff]  }
 0x5bd   : > { %1766 = vmatprep.subr.bf16.mxu1 %v2855_v49  ;;  %v2903_v49 = vld [vmem:[#allocation13] sm:$0xff]  }
 0x5c0   : > { %v2956_v53 = vpop.eup %2955  ;;  %v1269_v56 = vpop.f32.mrb[20].mxu1 }
 0x5c1   : > { %v2958_v60 = vpop.eup %2957  ;;  %v2655_v61 = vpop.f32.mrb[21].mxu1  ;;  %v1367_v63 = vmul.f32 %v2956_v53, %v1231_v41  ;;  %v2864_v53 = vld [vmem:[#allocation11 + $0x2c] ss:$16 sps:$4 sm:$0xff]  }
 0x5c2   : > { %v2960_v0 = vpop.eup %2959  ;;  %v1272_v1 = vpop.f32.mrb[22].mxu1  ;;  %v1368_v2 = vmul.f32 %v2958_v60, %v1269_v56  ;;  %v2859_v56 = vld [vmem:[#allocation11 + $0x20] ss:$16 sps:$4 sm:$0xff]  }
 0x5c3   : > { %v1369_v3 = vmul.f32 %v2960_v0, %v1272_v1  ;;  %v2656_v5 = vpop.f32.mrb[23].mxu1  ;;  %v1374_v6 = vpack.c.bf16 %v1367_v63, %v1366_v62  ;;  %v2962_v9 = vpop.eup %2961 }
 0x5c4   : > { %v1310_v7 = vpop.f32.mrb[8].mxu0  ;;  %v2964_v12 = vpop.eup %2963  ;;  %v2867_v5 = vld [vmem:[#allocation11 + $0x44] ss:$16 sps:$4 sm:$0xff]  }
 0x5c5   : > { %v1375_v10 = vpack.c.bf16 %v1369_v3, %v1368_v2  ;;  %v2661_v11 = vpop.f32.mrb[9].mxu0  ;;  %v1370_v14 = vmul.f32 %v2962_v9, %v1310_v7  ;;  %v2966_v24 = vpop.eup %2965  ;;  %v2865_v7 = vld [vmem:[#allocation11 + $0x40] ss:$16 sps:$4 sm:$0xff]   ;;  %v2873_v9 = vld [vmem:[#allocation11 + $0x64] ss:$16 sps:$4 sm:$0xff]  }
 0x5c6   : > { %v1313_v13 = vpop.f32.mrb[10].mxu0  ;;  %v2968_v26 = vpop.eup %2967  ;;  %v2871_v11 = vld [vmem:[#allocation11 + $0x60] ss:$16 sps:$4 sm:$0xff]  }
 0x5c7   : > { %v1371_v16 = vmul.f32 %v2964_v12, %v1313_v13  ;;  %v2662_v17 = vpop.f32.mrb[11].mxu0  ;;  %1379 = vrot.lane.b32.xlu1 %v1375_v10, %s3288_s29  ;;  %v2876_v10 = vld [vmem:[#allocation11 + $0x6c] ss:$16 sps:$4 sm:$0xff]   ;;  %v2874_v12 = vld [vmem:[#allocation11 + $0x68] ss:$16 sps:$4 sm:$0xff]  }
 0x5c8   : > { %v2879_v13 = vld [vmem:[#allocation11 + $0x84] ss:$16 sps:$4 sm:$0xff]   ;;  %v2880_v17 = vld [vmem:[#allocation11 + $0x88] ss:$16 sps:$4 sm:$0xff]  }
 0x5c9   : > { %v1376_v19 = vpack.c.bf16 %v1371_v16, %v1370_v14  ;;  %v2882_v14 = vld [vmem:[#allocation11 + $0x8c] ss:$16 sps:$4 sm:$0xff]   ;;  %v2877_v16 = vld [vmem:[#allocation11 + $0x80] ss:$16 sps:$4 sm:$0xff]  }
 0x5cb   : > { %1382 = vrot.lane.b32.xlu0 %v1376_v19, %s3289_s30  ;;  %v2888_v19 = vld [vmem:[#allocation11 + $0xac] ss:$16 sps:$4 sm:$0xff]  }
 0x5f9   : > { %v1351_v23 = vpop.f32.mrb[24].mxu1 }
 0x5fa   : > { %v2667_v25 = vpop.f32.mrb[25].mxu1  ;;  %v1372_v28 = vmul.f32 %v2966_v24, %v1351_v23  ;;  %v2889_v23 = vld [vmem:[#allocation11 + $0xc0] ss:$16 sps:$4 sm:$0xff]   ;;  %v2892_v24 = vld [vmem:[#allocation11 + $0xc8] ss:$16 sps:$4 sm:$0xff]  }
 0x5fb   : > { %v1354_v27 = vpop.f32.mrb[26].mxu1  ;;  %v2897_v25 = vld [vmem:[#allocation11 + $0xe4] ss:$16 sps:$4 sm:$0xff]  }
 0x5fc   : > { %v1373_v29 = vmul.f32 %v2968_v26, %v1354_v27  ;;  %v2668_v31 = vpop.f32.mrb[27].mxu1  ;;  %v2895_v26 = vld [vmem:[#allocation11 + $0xe0] ss:$16 sps:$4 sm:$0xff]   ;;  %v2898_v27 = vld [vmem:[#allocation11 + $0xe8] ss:$16 sps:$4 sm:$0xff]  }
 0x5fe   : > { %v1377_v32 = vpack.c.bf16 %v1373_v29, %v1372_v28  ;;  %v2900_v28 = vld [vmem:[#allocation11 + $0xec] ss:$16 sps:$4 sm:$0xff]  }
 0x600   : > { %1385 = vrot.lane.b32.xlu1 %v1377_v32, %s3287_s14  ;;  %s3901_s14 = sld [smem:[#allocation24_spill]] }
 0x639   : > { %v1380_v33 = vpop.permute.xlu1 %1379 }
 0x63a   : > { %v1389_v4 = vsel %vm942_vm1, %v1374_v6, %v1380_v33  ;;  %v2870_v6 = vld [vmem:[#allocation11 + $0x4c] ss:$16 sps:$4 sm:$0xff]  }
 0x63d   : > { %v1383_v34 = vpop.permute.xlu0 %1382 }
 0x63e   : > { %v1392_v35 = vsel %vm1390_vm4, %v1389_v4, %v1383_v34 }
 0x672   : > { %v1386_v36 = vpop.permute.xlu1 %1385 }
 0x673   : > { %v1395_v37 = vsel %vm1393_vm5, %v1392_v35, %v1386_v36  ;;  %v2445_v36 = vld [vmem:[%s3899_s25] ss:$0 sm:$0xff] }
 0x674   : > { %2686 = vmatmul.mubr.bf16.vlgmr.msra.gmra.mrb[12].mxu0 %v1395_v37 }
 0x675   : > { %1841 = vmatprep.mubr.bf16.mxu0 %v3285_v30  ;;  %v2853_v30 = vld [vmem:[#allocation11] ss:$16 sps:$4 sm:$0xff]   ;;  %1810 = vmatpush1.bf16.msra.mxu0 %v2856_v50 }
 0x676   : > { %1767 = vmatpush1.bf16.msra.mxu1 %v2853_v30  ;;  %1811 = vmatprep.subr.bf16.mxu0 %v2864_v53  ;;  %v2902_v30 = vld [vmem:[#allocation13 + $0xc0] sm:$0xff]   ;;  %v2907_v53 = vld [vmem:[#allocation13 + $0x8] sm:$0xff]  }
 0x677   : > { %1768 = vmatprep.subr.bf16.mxu1 %v2861_v52  ;;  %v2904_v50 = vld [vmem:[#allocation13 + $0x80] sm:$0xff]   ;;  %v2906_v52 = vld [vmem:[#allocation13 + $0xc8] sm:$0xff]  }
 0x679   : > { %1812 = vmatpush1.bf16.msra.mxu0 %v2862_v59  ;;  %v2909_v59 = vld [vmem:[#allocation13 + $0x50] sm:$0xff]  }
 0x67a   : > { %1769 = vmatpush1.bf16.msra.mxu1 %v2859_v56  ;;  %1813 = vmatprep.subr.bf16.mxu0 %v2870_v6  ;;  %v2908_v56 = vld [vmem:[#allocation13 + $0x88] sm:$0xff]   ;;  %v2919_v6 = vld [vmem:[#allocation13 + $0x20] sm:$0xff]  }
 0x67b   : > { %1770 = vmatprep.subr.bf16.mxu1 %v2867_v5  ;;  %v2918_v5 = vld [vmem:[#allocation13 + $0xe0] sm:$0xff]  }
 0x67d   : > { %1814 = vmatpush1.bf16.msra.mxu0 %v2868_v8  ;;  %v2921_v8 = vld [vmem:[#allocation13 + $0x68] sm:$0xff]  }
 0x67e   : > { %1771 = vmatpush1.bf16.msra.mxu1 %v2865_v7  ;;  %1815 = vmatprep.subr.bf16.mxu0 %v2876_v10  ;;  %v2920_v7 = vld [vmem:[#allocation13 + $0xa0] sm:$0xff]   ;;  %v2923_v10 = vld [vmem:[#allocation13 + $0x28] sm:$0xff]  }
 0x67f   : > { %1772 = vmatprep.subr.bf16.mxu1 %v2873_v9  ;;  %v2922_v9 = vld [vmem:[#allocation13 + $0xe8] sm:$0xff]  }
 0x681   : > { %1816 = vmatpush1.bf16.msra.mxu0 %v2874_v12  ;;  %v2925_v12 = vld [vmem:[#allocation13 + $0x70] sm:$0xff]  }
 0x682   : > { %1773 = vmatpush1.bf16.msra.mxu1 %v2871_v11  ;;  %1817 = vmatprep.subr.bf16.mxu0 %v2882_v14  ;;  %v2924_v11 = vld [vmem:[#allocation13 + $0xa8] sm:$0xff]   ;;  %v2927_v14 = vld [vmem:[#allocation13 + $0x30] sm:$0xff]  }
 0x683   : > { %1774 = vmatprep.subr.bf16.mxu1 %v2879_v13  ;;  %v2926_v13 = vld [vmem:[#allocation13 + $0xf0] sm:$0xff]  }
 0x685   : > { %1818 = vmatpush1.bf16.msra.mxu0 %v2880_v17  ;;  %v2929_v17 = vld [vmem:[#allocation13 + $0x78] sm:$0xff]  }
 0x686   : > { %1775 = vmatpush1.bf16.msra.mxu1 %v2877_v16  ;;  %1819 = vmatprep.subr.bf16.mxu0 %v2888_v19  ;;  %v2928_v16 = vld [vmem:[#allocation13 + $0xb0] sm:$0xff]   ;;  %v2931_v19 = vld [vmem:[#allocation13 + $0x38] sm:$0xff]  }
 0x687   : > { %1776 = vmatprep.subr.bf16.mxu1 %v2885_v18  ;;  %v2930_v18 = vld [vmem:[#allocation13 + $0xf8] sm:$0xff]  }
 0x689   : > { %1820 = vmatpush1.bf16.msra.mxu0 %v2886_v21  ;;  %v1584_v21 = vld [vmem:[%s3901_s14] sm:$0xf]  ;;  %s3195_s14 = scalar_lea.vmem %s3194_s17, 512 }
 0x68a   : > { %1777 = vmatpush1.bf16.msra.mxu1 %v2883_v20  ;;  %1821 = vmatprep.subr.bf16.mxu0 %v2894_v15  ;;  %v2932_v20 = vld [vmem:[#allocation13 + $0xb8] sm:$0xff]   ;;  %v1589_v15 = vrot.slane %v1584_v21, %v679_v55  ;;  %p3197_p3 = scmp.lt.s32.totalorder %s3195_s14, %s3189_s23 }
 0x68b   : > { %1778 = vmatprep.subr.bf16.mxu1 %v2891_v22  ;;  %v1600_v22 = vsub.s32 3, %v3684_v54 }
 0x68c   : > { %p3198_p2 = por %p3197_p3, %p3196_p1 }
 0x68d   : > { %1822 = vmatpush1.bf16.msra.mxu0 %v2892_v24 }
 0x68e   : > { %1779 = vmatpush1.bf16.msra.mxu1 %v2889_v23  ;;  %1823 = vmatprep.subr.bf16.mxu0 %v2900_v28  ;;  %v1597_v23 = vrot.slane %v1584_v21, %v687_v57  ;;  %p3199_p8 = pnand %p3198_p2, %p3192_p13 }
 0x68f   : > { %1780 = vmatprep.subr.bf16.mxu1 %v2897_v25 }
 0x691   : > { %1824 = vmatpush1.bf16.msra.mxu0 %v2898_v27  ;;  %v1601_v27 = vrot.slane %v1584_v21, %v1600_v22 }
 0x692   : > { %1781 = vmatpush1.bf16.msra.mxu1 %v2895_v26  ;;  %2579 = vmatprep.subr.bf16.mxu0 %v2902_v30  ;;  %v1593_v26 = vrot.slane %v1584_v21, %v683_v58 }
 0x747   : > { %v1502_v39 = vpop.f32.mrb[12].mxu0 }
 0x748   : > { %v1503_v40 = vadd.f32 %v2436_v38, %v1502_v39  ;;  %v2687_v41 = vpop.f32.mrb[13].mxu0 }
 0x749   : > { %v1505_v42 = vpop.f32.mrb[14].mxu0  ;;  %v2446_v41 = vld [vmem:[%s3900_s21] ss:$0 sm:$0xff]  ;;  %s3809_s21 = scalar_lea.hbm %s3903_s15, %s2522_s28 }
 0x74a   : > { %v3762_v44 = vadd.f32 %v2989_v43, %v1503_v40  ;;  %v1506_v45 = vadd.f32 %v2436_v38, %v1505_v42  ;;  %v2688_v46 = vpop.f32.mrb[15].mxu0 }
 0x74c   : > { %v3765_v48 = vadd.f32 %v2990_v47, %v1506_v45  ;;  %1513 = vadd.xlane.f32.xlu1 %v3762_v44  ;;  %v2901_v47 = vld [vmem:[#allocation13 + $0x40] sm:$0xff]  }
 0x74d   : > { %2557 = vmatprep.subr.bf16.mxu1 %v2901_v47 }
 0x74e   : > { %1515 = vadd.xlane.f32.xlu0 %v3765_v48 }
 0x7d9   : > { %v1514_v60 = vpop.xlane.xlu1 %1513 }
 0x7da   : > { %v1517_v61 = vmul.f32 0.0078125, %v1514_v60  ;;  %v2910_v60 = vld [vmem:[#allocation13 + $0xd0] sm:$0xff]  }
 0x7db   : > { %v1516_v62 = vpop.xlane.xlu0 %1515 }
 0x7dc   : > { %v3770_v63 = vsub.f32 %v3762_v44, %v1517_v61  ;;  %v1518_v0 = vmul.f32 0.0078125, %v1516_v62  ;;  %v2911_v61 = vld [vmem:[#allocation13 + $0x10] sm:$0xff]  }
 0x7dd   : > { %v2912_v62 = vld [vmem:[#allocation13 + $0x90] sm:$0xff]  }
 0x7de   : > { %v3773_v1 = vsub.f32 %v3765_v48, %v1518_v0  ;;  %v1521_v2 = vmul.f32 %v3770_v63, %v3770_v63  ;;  %v2914_v0 = vld [vmem:[#allocation13 + $0xd8] sm:$0xff]  }
 0x7e0   : > { %1523 = vadd.xlane.f32.xlu0 %v1521_v2  ;;  %v1522_v3 = vmul.f32 %v3773_v1, %v3773_v1  ;;  %v2916_v2 = vld [vmem:[#allocation13 + $0x98] sm:$0xff]  }
 0x7e2   : > { %1525 = vadd.xlane.f32.xlu1 %v1522_v3  ;;  %v2917_v3 = vld [vmem:[#allocation13 + $0x60] sm:$0xff]  }
 0x86d   : > { %v1524_v29 = vpop.xlane.xlu0 %1523 }
 0x86e   : > { %v1527_v31 = vmul.f32 0.0078125, %v1524_v29 }
 0x86f   : > { %v1526_v32 = vpop.xlane.xlu1 %1525 }
 0x870   : > { %v1529_v33 = vadd.f32 1e-05, %v1527_v31  ;;  %v1528_v34 = vmul.f32 0.0078125, %v1526_v32 }
 0x872   : > { %2969 = vrsqrt.f32 %v1529_v33  ;;  %v1530_v4 = vadd.f32 1e-05, %v1528_v34 }
 0x874   : > { %2971 = vrsqrt.f32 %v1530_v4 }
 0x87c   : > { %v2970_v35 = vpop.eup %2969 }
 0x87d   : > { %v1533_v37 = vmul.f32 %v2970_v35, %v3770_v63  ;;  %v2913_v63 = vld [vmem:[#allocation13 + $0x58] sm:$0xff]  }
 0x87e   : > { %v2972_v38 = vpop.eup %2971 }
 0x87f   : > { %v1534_v39 = vmul.f32 %v2972_v38, %v3773_v1  ;;  %v1541_v40 = vmul.f32 %v2445_v36, %v1533_v37  ;;  %v2915_v1 = vld [vmem:[#allocation13 + $0x18] sm:$0xff]  }
 0x881   : > { %v1542_v42 = vmul.f32 %v2445_v36, %v1534_v39  ;;  %v1549_v43 = vadd.f32 %v2446_v41, %v1541_v40 }
 0x883   : > { %v1550_v45 = vadd.f32 %v2446_v41, %v1542_v42 }
 0x885   : > { %v1551_v46 = vpack.c.bf16 %v1550_v45, %v1549_v43 }
 0x887   : > { %1799 = vmatmul.mubr.bf16.vlgmr.msra.gmra.mrb[28].mxu1 %v1551_v46  ;;  %1842 = vmatmul.mubr.bf16.vlgmr.msra.gmra.mrb[16].mxu0 %v1551_v46 }
 0x888   : > { %2558 = vmatpush3.bf16.msra.mxu1 %v2903_v49  ;;  %2580 = vmatpush3.bf16.msra.mxu0 %v2904_v50 }
 0x889   : > { %2559 = vmatprep.subr.bf16.mxu1 %v2905_v51  ;;  %2581 = vmatprep.subr.bf16.mxu0 %v2906_v52 }
 0x88c   : > { %2560 = vmatpush3.bf16.msra.mxu1 %v2907_v53  ;;  %2582 = vmatpush3.bf16.msra.mxu0 %v2908_v56 }
 0x88d   : > { %2561 = vmatprep.subr.bf16.mxu1 %v2909_v59  ;;  %2583 = vmatprep.subr.bf16.mxu0 %v2910_v60 }
 0x890   : > { %2562 = vmatpush3.bf16.msra.mxu1 %v2911_v61  ;;  %2584 = vmatpush3.bf16.msra.mxu0 %v2912_v62 }
 0x891   : > { %2563 = vmatprep.subr.bf16.mxu1 %v2913_v63  ;;  %2585 = vmatprep.subr.bf16.mxu0 %v2914_v0 }
 0x894   : > { %2564 = vmatpush3.bf16.msra.mxu1 %v2915_v1  ;;  %2586 = vmatpush3.bf16.msra.mxu0 %v2916_v2 }
 0x895   : > { %2565 = vmatprep.subr.bf16.mxu1 %v2917_v3  ;;  %2587 = vmatprep.subr.bf16.mxu0 %v2918_v5 }
 0x898   : > { %2566 = vmatpush3.bf16.msra.mxu1 %v2919_v6  ;;  %2588 = vmatpush3.bf16.msra.mxu0 %v2920_v7 }
 0x899   : > { %2567 = vmatprep.subr.bf16.mxu1 %v2921_v8  ;;  %2589 = vmatprep.subr.bf16.mxu0 %v2922_v9 }
 0x89c   : > { %2568 = vmatpush3.bf16.msra.mxu1 %v2923_v10  ;;  %2590 = vmatpush3.bf16.msra.mxu0 %v2924_v11 }
 0x89d   : > { %2569 = vmatprep.subr.bf16.mxu1 %v2925_v12  ;;  %2591 = vmatprep.subr.bf16.mxu0 %v2926_v13 }
 0x8a0   : > { %2570 = vmatpush3.bf16.msra.mxu1 %v2927_v14  ;;  %2592 = vmatpush3.bf16.msra.mxu0 %v2928_v16  ;;  %v2483_v14 = vld [vmem:[%s3902_s24] ss:$0 sm:$0xff] }
 0x8a1   : > { %2571 = vmatprep.subr.bf16.mxu1 %v2929_v17  ;;  %2593 = vmatprep.subr.bf16.mxu0 %v2930_v18 }
 0x8a4   : > { %2572 = vmatpush3.bf16.msra.mxu1 %v2931_v19  ;;  %2594 = vmatpush3.bf16.msra.mxu0 %v2932_v20 }
 0x95a   : > { %v1800_v24 = vpop.f32.mrb[28].mxu1  ;;  %v1843_v25 = vpop.f32.mrb[16].mxu0 }
 0x95b   : > { %v1802_v28 = vpop.f32.mrb[29].mxu1  ;;  %v1845_v29 = vpop.f32.mrb[17].mxu0  ;;  %v1801_v33 = vadd.f32 %v1800_v24, %v1589_v15  ;;  %v1844_v34 = vadd.f32 %v1843_v25, %v1597_v23 }
 0x95c   : > { %v1804_v31 = vpop.f32.mrb[30].mxu1  ;;  %v1847_v32 = vpop.f32.mrb[18].mxu0  ;;  %v1803_v55 = vadd.f32 %v1802_v28, %v1593_v26  ;;  %v1846_v38 = vadd.f32 %v1845_v29, %v1601_v27 }
 0x95d   : > { %v1805_v4 = vadd.f32 %v1804_v31, %v1589_v15  ;;  %v1848_v35 = vadd.f32 %v1847_v32, %v1597_v23  ;;  %v1806_v36 = vpop.f32.mrb[31].mxu1  ;;  %v1849_v37 = vpop.f32.mrb[19].mxu0 }
 0x95e   : > { %v1807_v39 = vadd.f32 %v1806_v36, %v1593_v26  ;;  %v1850_v57 = vadd.f32 %v1849_v37, %v1601_v27 }
 0x95f   : > { %v1852_v40 = vpack.c.bf16 %v1805_v4, %v1801_v33  ;;  %v1854_v41 = vpack.c.bf16 %v1848_v35, %v1844_v34 }
 0x960   : > { %v1853_v42 = vpack.c.bf16 %v1807_v39, %v1803_v55  ;;  %v1855_v54 = vpack.c.bf16 %v1850_v57, %v1846_v38 }
 0x961   : > { %v2479_v58 = vmul.bf16 3218784218, %v1852_v40  ;;  %v2481_v43 = vmul.bf16 3218784218, %v1854_v41 }
 0x962   : > { %v2480_v45 = vmul.bf16 3218784218, %v1853_v42  ;;  %v2482_v46 = vmul.bf16 3218784218, %v1855_v54 }
 0x963   : > { %v1865_v47 = vmul.bf16 1069105081, %v2479_v58  ;;  %v1871_v30 = vmul.bf16 1069105081, %v2481_v43 }
 0x964   : > { %v1868_v49 = vmul.bf16 1069105081, %v2480_v45  ;;  %v1874_v50 = vmul.bf16 1069105081, %v2482_v46 }
 0x965   : > { %2973 = vpow.bf16 %v1865_v47 }
 0x966   : > { %2975 = vpow.bf16 %v1871_v30 }
 0x967   : > { %2977 = vpow.bf16 %v1868_v49 }
 0x968   : > { %2979 = vpow.bf16 %v1874_v50 }
 0x970   : > { %v2974_v51 = vpop.eup %2973 }
 0x971   : > { %v2976_v52 = vpop.eup %2975  ;;  %v1876_v53 = vadd.bf16 1065369472, %v2974_v51 }
 0x972   : > { %v2978_v56 = vpop.eup %2977  ;;  %v1878_v59 = vadd.bf16 1065369472, %v2976_v52 }
 0x973   : > { %v2980_v60 = vpop.eup %2979  ;;  %2981 = vrcp.bf16 %v1876_v53  ;;  %v1877_v61 = vadd.bf16 1065369472, %v2978_v56 }
 0x974   : > { %2983 = vrcp.bf16 %v1878_v59  ;;  %v1879_v62 = vadd.bf16 1065369472, %v2980_v60 }
 0x975   : > { %2985 = vrcp.bf16 %v1877_v61 }
 0x976   : > { %2987 = vrcp.bf16 %v1879_v62 }
 0x97e   : > { %v2982_v63 = vpop.eup %2981 }
 0x97f   : > { %v2984_v0 = vpop.eup %2983  ;;  %v1881_v2 = vmul.bf16 1065369472, %v2982_v63 }
 0x980   : > { %v2986_v1 = vpop.eup %2985  ;;  %v1885_v5 = vmul.bf16 1065369472, %v2984_v0 }
 0x981   : > { %v2988_v3 = vpop.eup %2987  ;;  %v1883_v6 = vmul.bf16 1065369472, %v2986_v1  ;;  %v1888_v9 = vmul.bf16 %v1881_v2, %v1852_v40 }
 0x982   : > { %v1887_v7 = vmul.bf16 1065369472, %v2988_v3  ;;  %v1890_v11 = vmul.bf16 %v1885_v5, %v1854_v41 }
 0x983   : > { %v1889_v8 = vmul.bf16 %v1883_v6, %v1853_v42 }
 0x984   : > { %v1891_v10 = vmul.bf16 %v1887_v7, %v1855_v54 }
 0x985   : > { %2187 = vmatprep.mubr.bf16.mxu1 %v1889_v8 }
 0x986   : > { %2228 = vmatprep.mubr.bf16.mxu0 %v1891_v10  ;;  %2188 = vmatmul.mubr.bf16.vlgmr.msra.gmra.mrb[32].mxu1 %v1888_v9 }
 0x987   : > { %2229 = vmatmul.mubr.bf16.vlgmr.msra.gmra.mrb[20].mxu0 %v1890_v11 }
 0xa59   : > { %v2573_v12 = vpop.f32.mrb[32].mxu1 }
 0xa5a   : > { %v2595_v13 = vpop.f32.mrb[20].mxu0  ;;  %v2574_v16 = vpop.f32.mrb[33].mxu1 }
 0xa5b   : > { %v2575_v17 = vadd.f32 %v2574_v16, %v2573_v12  ;;  %v2596_v18 = vpop.f32.mrb[21].mxu0  ;;  %v2576_v19 = vpop.f32.mrb[34].mxu1 }
 0xa5c   : > { %v2597_v20 = vadd.f32 %v2596_v18, %v2595_v13  ;;  %v2598_v21 = vpop.f32.mrb[22].mxu0  ;;  %v2577_v22 = vpop.f32.mrb[35].mxu1 }
 0xa5d   : > { %v2190_v15 = vadd.f32 %v2575_v17, %v2483_v14  ;;  %v2578_v23 = vadd.f32 %v2577_v22, %v2576_v19  ;;  %v2599_v24 = vpop.f32.mrb[23].mxu0 }
 0xa5e   : > { %v2600_v25 = vadd.f32 %v2599_v24, %v2598_v21 }
 0xa5f   : > { %v2231_v26 = vadd.f32 %v2597_v20, %v2190_v15  ;;  %v2193_v27 = vadd.f32 %v2578_v23, %v2483_v14 }
 0xa61   : > { %v2237_v28 = vadd.f32 %v2231_v26, %v3762_v44  ;;  %v2234_v29 = vadd.f32 %v2600_v25, %v2193_v27 }
 0xa63   : > { %2239 = vst [vmem:[%s595_s16] sm:$0xff] %v2237_v28  ;;  %v2238_v31 = vadd.f32 %v2234_v29, %v3765_v48 }
 0xa65   : > { %2240 = vst [vmem:[%s595_s16 + $0x8] sm:$0xff] %v2238_v31 }
 0xa66   : > { %3202 = shalt.err (!%p3199_p8)
}
 0xa67   : > { %s3203_s29 = scalar_lea.hbm %s3809_s21, 256  ;;  %s3207_s16 = scalar_lea.hbm %s3903_s15, 512 }
 0xa68   : > { %p3204_p10 = scmp.ne.s32.totalorder %s3809_s21, %s3203_s29  ;;  %p3208_p0 = scmp.lt.u32.totalorder %s3809_s21, %s3903_s15 }
 0xa69   : > { %p3209_p5 = scmp.lt.u32.totalorder %s3207_s16, %s3203_s29  ;;  %p3211_p6 = scmp.lt.u32.totalorder %s3203_s29, %s3809_s21 }
 0xa6a   : > { %p3205_p11 = pnand %p3204_p10, %p3904_p9 }
 0xa6b   : > { %p3210_p7 = por %p3209_p5, %p3208_p0 }
 0xa6c   : > { %p3206_p12 = pneg %p3205_p11 }
 0xa6d   : > { %p3212_p4 = por %p3211_p6, %p3210_p7 }
 0xa6f   : > { %p3213_p13 = pnand %p3212_p4, %p3206_p12 }
 0xa71   : > { %3216 = shalt.err (!%p3213_p13)
}
 0xa72   : > { %s3292_s8 = smov 128   ;;  %s3293_s23 = smov 8  }
 0xa73   : > { %2715 = dma.vmem_to_hbm [thread:$0]  (%p3904_p9), %s3804_s27, 256, %s3809_s21, %s2242_s12, %s3292_s8, %s3292_s8, %s3293_s23  }
 0xa74 PF: > { %s2270_s22 = sand.u32 1, %s3255_s18   ;;  %p3905_p1 = scmp.ne.s32.totalorder %s3890_s7, 0 }
 0xa75   : > { %p3906_p3 = scmp.ge.s32.totalorder %s3267_s13, 2  ;;  %s2271_s17 = scalar_lea.sflag [#allocation4], %s2270_s22 }
 0xa77   : > { %p2741_p2 = pnand %p3906_p3, %p3905_p1 }
 0xa79   : > { %3250 = dma.done.wait (!%p2741_p2), %s2271_s17, 256  }
 0xa7a   : > { %3252 = vsyncadd (!%p2741_p2), %s2271_s17, 4294967040  ;;  %p31_p8 = scmp.ge.s32.totalorder %s3551_s26, 4   ;;  %s3907_s18 = smov %s3259_s19 }
 0xa7b   : > { %s3908_s19 = smov %s3263_s20  ;;  %s3909_s20 = smov %s3562_s10 }
 0xa7c   : > { %s3910_s13 = smov %s3551_s26  ;;  %33 = sbr.rel (!%p31_p8) target bundleno = 16 (0x10), region = 149 }
 0xa83   :  { %2276 = vsyncpa [#allocation3], 1 }
 0xa84   :  { %2278 = vsyncpa [#allocation3 + $0x1], 1 }
 0xa85   :  { %2279 = vsyncpa [#allocation6], 1 }
 0xa86   :  { %2280 = vsyncpa [#allocation9], 1 }
 0xa87   :  { %2281 = vsyncpa [#allocation12], 1 }
 0xa88   :  { %2282 = vsyncpa [#allocation4], 1 }
 0xa89   :  { %2284 = vsyncpa [#allocation4 + $0x1], 1 }

</bundles_post_ra>
